<compile_context>
chip_gen: v6e
topology: v6e:2x2x1
jax: 0.10.0
libtpu: 0.0.40
codegen_flags: <defaults>
</compile_context>

<pallas_src>
import math

import numpy as np

import jax
import jax.numpy as jnp
from jax.experimental import pallas as pl
from jax.experimental.pallas import tpu as pltpu

# small test config consistent with the reference module
N_EMBD = 64
N_HEADS = 8
N_LAYERS = 6
N_VOCAB = 32          # stand-in for len(chars)
D_K = N_EMBD // N_HEADS
V_PAD = 128           # lane-dense padded vocab for the logits store
EPS = 1e-5            # nn.LayerNorm default
NEG_INF = -1e30       # additive mask value (kept in f32 math only)


def _layernorm(x, gamma, beta):
    mean = jnp.mean(x, axis=-1, keepdims=True)
    var = jnp.mean(jnp.square(x - mean), axis=-1, keepdims=True)
    inv = jax.lax.rsqrt(var + EPS)
    return (x - mean) * inv * gamma + beta


def fused_transformer_kernel(
        x_ref, amask_ref, hmask_ref,
        wqkv_ref, bqkv_ref, wout_ref, bout_ref,
        g1_ref, be1_ref,
        w1_ref, b1_ref, w2_ref, b2_ref,
        g2_ref, be2_ref,
        wlin_ref, blin_ref,
        logits_ref,
        act_ref):
    layer = pl.program_id(0)

    # load the (B*T, C) embedding slab once; activation stays VMEM-resident
    @pl.when(layer == 0)
    def _():
        act_ref[...] = x_ref[...]

    x = act_ref[...]                                   # (N, C) f32, N = B*T
    x_bf = x.astype(jnp.bfloat16)
    C = N_EMBD

    # ---- fused QKV projection: one 2-D (N, C) @ (C, 3C) bf16 matmul.
    # Columns are pre-grouped [Q_all | K_all | V_all]; 1/sqrt(d_k) is already
    # folded into the Q weight/bias columns.
    qkv = jnp.dot(x_bf, wqkv_ref[...],
                  preferred_element_type=jnp.float32) + bqkv_ref[...]
    q = qkv[:, :C]
    k = qkv[:, C:2 * C]
    v = qkv[:, 2 * C:3 * C]

    amask = amask_ref[...]                             # (N, N) additive mask
    hmask = hmask_ref[...]                             # (H, C) head selectors

    # ---- multi-head attention over the folded (B*T) axis.
    # Per head: full-width masked score matmul (head columns of q selected by a
    # 0/1 lane mask) + masked p@v accumulated straight into the lane-dense
    # (N, C) output layout — no 8-lane slices, no lane concat.
    attn = jnp.zeros_like(x)
    for h in range(N_HEADS):
        hm = hmask[h:h + 1, :]                         # (1, C) 0/1 selector
        s = jnp.einsum('nc,mc->nm', q * hm, k,
                       preferred_element_type=jnp.float32) + amask
        s = s - jnp.max(s, axis=-1, keepdims=True)
        p = jnp.exp(s)
        p = p * pl.reciprocal(jnp.sum(p, axis=-1, keepdims=True), approx=True)
        attn = attn + jnp.dot(p, v * hm, preferred_element_type=jnp.float32)

    attn = jnp.dot(attn.astype(jnp.bfloat16), wout_ref[...],
                   preferred_element_type=jnp.float32) + bout_ref[...]

    # ---- residual + LayerNorm 1 (f32 VPU math) ----
    h1 = _layernorm(x + attn, g1_ref[...], be1_ref[...])

    # ---- feed-forward ----
    ff = jnp.dot(h1.astype(jnp.bfloat16), w1_ref[...],
                 preferred_element_type=jnp.float32) + b1_ref[...]
    ff = jnp.maximum(ff, 0.0)
    ff = jnp.dot(ff.astype(jnp.bfloat16), w2_ref[...],
                 preferred_element_type=jnp.float32) + b2_ref[...]

    # reference quirk: norm2(out + out) == LayerNorm(2 * ff), no residual from h1
    out = _layernorm(ff + ff, g2_ref[...], be2_ref[...])
    act_ref[...] = out

    # ---- LM head fused into the last layer step (lane-dense padded vocab) ----
    @pl.when(layer == pl.num_programs(0) - 1)
    def _():
        logits_ref[...] = jnp.dot(out.astype(jnp.bfloat16), wlin_ref[...],
                                  preferred_element_type=jnp.float32) + blin_ref[...]


def run_fused(x2, amask, hmask, sp, wlin, blin):
    N, C = x2.shape          # N = B*T
    L = N_LAYERS
    F4 = 4 * C

    in_specs = [
        pl.BlockSpec((N, C), lambda l: (0, 0)),                  # embeddings (flat)
        pl.BlockSpec((N, N), lambda l: (0, 0)),                  # additive attn mask
        pl.BlockSpec((N_HEADS, C), lambda l: (0, 0)),            # head selectors
        pl.BlockSpec((None, C, 3 * C), lambda l: (l, 0, 0)),     # wqkv
        pl.BlockSpec((None, 1, 3 * C), lambda l: (l, 0, 0)),     # bqkv
        pl.BlockSpec((None, C, C), lambda l: (l, 0, 0)),         # wout
        pl.BlockSpec((None, 1, C), lambda l: (l, 0, 0)),         # bout
        pl.BlockSpec((None, 1, C), lambda l: (l, 0, 0)),         # g1
        pl.BlockSpec((None, 1, C), lambda l: (l, 0, 0)),         # be1
        pl.BlockSpec((None, C, F4), lambda l: (l, 0, 0)),        # w1
        pl.BlockSpec((None, 1, F4), lambda l: (l, 0, 0)),        # b1
        pl.BlockSpec((None, F4, C), lambda l: (l, 0, 0)),        # w2
        pl.BlockSpec((None, 1, C), lambda l: (l, 0, 0)),         # b2
        pl.BlockSpec((None, 1, C), lambda l: (l, 0, 0)),         # g2
        pl.BlockSpec((None, 1, C), lambda l: (l, 0, 0)),         # be2
        pl.BlockSpec((C, V_PAD), lambda l: (0, 0)),              # wlin (padded)
        pl.BlockSpec((1, V_PAD), lambda l: (0, 0)),              # blin (padded)
    ]

    args = (x2, amask, hmask,
            sp['wqkv'], sp['bqkv'], sp['wout'], sp['bout'],
            sp['g1'], sp['be1'], sp['w1'], sp['b1'], sp['w2'], sp['b2'],
            sp['g2'], sp['be2'], wlin, blin)

    # advisory cost estimate for XLA scheduling around the custom call
    flops = int(L * (2 * N * C * 3 * C                       # qkv proj
                     + N_HEADS * (2 * N * C * N + 2 * N * N * C)  # masked qk^T + pv
                     + 2 * N * C * C                         # out proj
                     + 2 * 2 * N * C * F4)                   # ffn
                + 2 * N * C * V_PAD)                         # lm head
    transcendentals = int(L * N_HEADS * N * N + L * 4 * N)
    bytes_accessed = int(sum(a.size * a.dtype.itemsize for a in args)
                         + N * V_PAD * 4)

    grid_spec = pltpu.PrefetchScalarGridSpec(
        num_scalar_prefetch=0,
        grid=(L,),                                           # single layer loop
        in_specs=in_specs,
        out_specs=pl.BlockSpec((N, V_PAD), lambda l: (0, 0)),
        scratch_shapes=[pltpu.VMEM((N, C), jnp.float32)],    # resident activation
    )

    return pl.pallas_call(
        fused_transformer_kernel,
        out_shape=jax.ShapeDtypeStruct((N, V_PAD), jnp.float32),
        grid_spec=grid_spec,
        compiler_params=pltpu.CompilerParams(
            dimension_semantics=("arbitrary",),
            vmem_limit_bytes=32 * 1024 * 1024,
        ),
        cost_estimate=pl.CostEstimate(flops=flops,
                                      transcendentals=transcendentals,
                                      bytes_accessed=bytes_accessed),
    )(*args)


# --------------------------- parameter setup (glue) ---------------------------

def _init_linear(key, fan_in, fan_out):
    """PyTorch nn.Linear-style init; returns torch-layout (out, in) weight."""
    kw, kb = jax.random.split(key)
    bound = 1.0 / math.sqrt(fan_in)
    w = jax.random.uniform(kw, (fan_out, fan_in), jnp.float32, -bound, bound)
    b = jax.random.uniform(kb, (fan_out,), jnp.float32, -bound, bound)
    return w, b


# Column permutation taking PyTorch's per-head-interleaved [q_h|k_h|v_h] output
# layout to grouped [Q_all | K_all | V_all] (head-major within each group), and
# the 1/sqrt(d_k) scale folded into the Q columns.
_QKV_PERM = np.array([3 * D_K * h + g * D_K + d
                      for g in range(3)
                      for h in range(N_HEADS)
                      for d in range(D_K)], dtype=np.int32)
_QKV_SCALE = np.ones((3 * N_EMBD,), np.float32)
_QKV_SCALE[:N_EMBD] = 1.0 / math.sqrt(D_K)


def init_block_params(key):
    k_qkv, k_out, k_ff1, k_ff2 = jax.random.split(key, 4)
    C = N_EMBD
    wqkv, bqkv = _init_linear(k_qkv, C, 3 * C)
    wout, bout = _init_linear(k_out, C, C)
    w1, b1 = _init_linear(k_ff1, C, 4 * C)
    w2, b2 = _init_linear(k_ff2, 4 * C, C)
    # regroup QKV output columns and pre-fold the attention scale into Q
    wqkv_g = wqkv.T[:, _QKV_PERM] * _QKV_SCALE[None, :]
    bqkv_g = bqkv[_QKV_PERM] * _QKV_SCALE
    return {
        'wqkv': wqkv_g, 'bqkv': bqkv_g.reshape(1, 3 * C),
        'wout': wout.T, 'bout': bout.reshape(1, C),
        'g1': jnp.ones((1, C), jnp.float32), 'be1': jnp.zeros((1, C), jnp.float32),
        'w1': w1.T, 'b1': b1.reshape(1, 4 * C),
        'w2': w2.T, 'b2': b2.reshape(1, C),
        'g2': jnp.ones((1, C), jnp.float32), 'be2': jnp.zeros((1, C), jnp.float32),
    }


def init_params(key):
    keys = jax.random.split(key, N_LAYERS + 2)
    emb = jax.random.normal(keys[0], (N_VOCAB, N_EMBD), jnp.float32)
    blocks = [init_block_params(keys[1 + i]) for i in range(N_LAYERS)]
    # stack per-layer params along a leading layer axis for the layer-loop grid
    stacked = {k: jnp.stack([b[k] for b in blocks], axis=0) for k in blocks[0]}
    # bf16 for MXU weight operands (biases / LN params stay f32)
    for k in ('wqkv', 'wout', 'w1', 'w2'):
        stacked[k] = stacked[k].astype(jnp.bfloat16)

    wlin, blin = _init_linear(keys[-1], N_EMBD, N_VOCAB)
    wlin_pad = jnp.zeros((N_EMBD, V_PAD), jnp.float32).at[:, :N_VOCAB].set(wlin.T)
    blin_pad = jnp.zeros((1, V_PAD), jnp.float32).at[:, :N_VOCAB].set(blin)
    return {'emb': emb, 'stacked': stacked,
            'wlin': wlin_pad.astype(jnp.bfloat16), 'blin': blin_pad}


def _make_masks(B, T):
    """Block-diagonal causal additive mask over the folded B*T axis, plus
    per-head 0/1 column selectors over the grouped C columns."""
    N = B * T
    n = np.arange(N)
    same_batch = (n[:, None] // T) == (n[None, :] // T)
    causal = (n[:, None] % T) >= (n[None, :] % T)
    amask = np.where(same_batch & causal, 0.0, NEG_INF).astype(np.float32)
    lanes = np.arange(N_EMBD)
    hmask = (lanes[None, :] // D_K == np.arange(N_HEADS)[:, None]).astype(np.float32)
    return jnp.asarray(amask), jnp.asarray(hmask)


@jax.jit
def transformer_forward(params, tokens):
    B, T = tokens.shape
    # token embedding (gather) — glue in plain JAX
    # TODO(synk): embedding gather kept outside the kernel (plain jnp.take).
    x = jnp.take(params['emb'], tokens, axis=0).reshape(B * T, N_EMBD)
    amask, hmask = _make_masks(B, T)
    logits_pad = run_fused(x, amask, hmask, params['stacked'],
                           params['wlin'], params['blin'])
    # loss is None (no labels); slice the lane padding off the vocab dim
    return logits_pad.reshape(B, T, V_PAD)[:, :, :N_VOCAB]


if __name__ == "__main__":
    B, T = 2, 8
    key = jax.random.PRNGKey(0)
    k_par, k_tok = jax.random.split(key)
    params = init_params(k_par)
    tokens = jax.random.randint(k_tok, (B, T), 0, N_VOCAB, dtype=jnp.int32)

    logits = transformer_forward(params, tokens)
    logits = jax.block_until_ready(logits)

    assert logits.shape == (B, T, N_VOCAB), logits.shape
    assert logits.dtype == jnp.float32
    assert bool(jnp.all(jnp.isfinite(logits)))
    print("KERNEL_OK")
</pallas_src>

<mosaic_0001>
module attributes {stable_mosaic.version = 11 : i64} {
  func.func @fused_transformer_kernel(%arg0: i32, %arg1: memref<16x64xf32, #tpu.memory_space<vmem>>, %arg2: memref<16x16xf32, #tpu.memory_space<vmem>>, %arg3: memref<8x64xf32, #tpu.memory_space<vmem>>, %arg4: memref<1x64x192xbf16, #tpu.memory_space<vmem>>, %arg5: memref<1x1x192xf32, #tpu.memory_space<vmem>>, %arg6: memref<1x64x64xbf16, #tpu.memory_space<vmem>>, %arg7: memref<1x1x64xf32, #tpu.memory_space<vmem>>, %arg8: memref<1x1x64xf32, #tpu.memory_space<vmem>>, %arg9: memref<1x1x64xf32, #tpu.memory_space<vmem>>, %arg10: memref<1x64x256xbf16, #tpu.memory_space<vmem>>, %arg11: memref<1x1x256xf32, #tpu.memory_space<vmem>>, %arg12: memref<1x256x64xbf16, #tpu.memory_space<vmem>>, %arg13: memref<1x1x64xf32, #tpu.memory_space<vmem>>, %arg14: memref<1x1x64xf32, #tpu.memory_space<vmem>>, %arg15: memref<1x1x64xf32, #tpu.memory_space<vmem>>, %arg16: memref<64x128xbf16, #tpu.memory_space<vmem>>, %arg17: memref<1x128xf32, #tpu.memory_space<vmem>>, %arg18: memref<16x128xf32, #tpu.memory_space<vmem>>, %arg19: memref<16x64xf32, #tpu.memory_space<vmem>>) attributes {dimension_semantics = [#tpu.dimension_semantics<arbitrary>], iteration_bounds = array<i64: 6>, scalar_prefetch = 0 : i64, scratch_operands = 1 : i64, tpu.core_type = #tpu.core_type<tc>, window_params = [{pipeline_mode = #tpu.pipeline_mode<synchronous>, transform_indices = @transform_0, window_bounds = array<i64: 16, 64>}, {pipeline_mode = #tpu.pipeline_mode<synchronous>, transform_indices = @transform_1, window_bounds = array<i64: 16, 16>}, {pipeline_mode = #tpu.pipeline_mode<synchronous>, transform_indices = @transform_2, window_bounds = array<i64: 8, 64>}, {transform_indices = @transform_3, window_bounds = array<i64: 1, 64, 192>}, {transform_indices = @transform_4, window_bounds = array<i64: 1, 1, 192>}, {transform_indices = @transform_5, window_bounds = array<i64: 1, 64, 64>}, {transform_indices = @transform_6, window_bounds = array<i64: 1, 1, 64>}, {transform_indices = @transform_7, window_bounds = array<i64: 1, 1, 64>}, {transform_indices = @transform_8, window_bounds = array<i64: 1, 1, 64>}, {transform_indices = @transform_9, window_bounds = array<i64: 1, 64, 256>}, {transform_indices = @transform_10, window_bounds = array<i64: 1, 1, 256>}, {transform_indices = @transform_11, window_bounds = array<i64: 1, 256, 64>}, {transform_indices = @transform_12, window_bounds = array<i64: 1, 1, 64>}, {transform_indices = @transform_13, window_bounds = array<i64: 1, 1, 64>}, {transform_indices = @transform_14, window_bounds = array<i64: 1, 1, 64>}, {pipeline_mode = #tpu.pipeline_mode<synchronous>, transform_indices = @transform_15, window_bounds = array<i64: 64, 128>}, {pipeline_mode = #tpu.pipeline_mode<synchronous>, transform_indices = @transform_16, window_bounds = array<i64: 1, 128>}, {pipeline_mode = #tpu.pipeline_mode<synchronous>, transform_indices = @transform_17, window_bounds = array<i64: 16, 128>}]} {
    %c0_i32 = arith.constant 0 : i32
    %0 = arith.cmpi eq, %arg0, %c0_i32 : i32
    %1 = arith.extui %0 : i1 to i32
    %c0_i32_0 = arith.constant 0 : i32
    %2 = arith.cmpi ne, %1, %c0_i32_0 : i32
    scf.if %2 {
      %c0_92 = arith.constant 0 : index
      %c0_93 = arith.constant 0 : index
      %254 = vector.load %arg1[%c0_92, %c0_93] : memref<16x64xf32, #tpu.memory_space<vmem>>, vector<16x64xf32>
      %c0_94 = arith.constant 0 : index
      %c0_95 = arith.constant 0 : index
      %255 = vector.load %arg19[%c0_94, %c0_95] : memref<16x64xf32, #tpu.memory_space<vmem>>, vector<16x64xf32>
      tpu.vector_store %arg19[%c0_94, %c0_95], %254 {strides = array<i32>} : memref<16x64xf32, #tpu.memory_space<vmem>>, vector<16x64xf32>,
    } else {
    }
    %c0 = arith.constant 0 : index
    %c0_1 = arith.constant 0 : index
    %3 = vector.load %arg19[%c0, %c0_1] : memref<16x64xf32, #tpu.memory_space<vmem>>, vector<16x64xf32>
    %4 = arith.truncf %3 : vector<16x64xf32> to vector<16x64xbf16>
    %c0_2 = arith.constant 0 : index
    %c0_3 = arith.constant 0 : index
    %c0_4 = arith.constant 0 : index
    %5 = vector.load %arg4[%c0_2, %c0_3, %c0_4] : memref<1x64x192xbf16, #tpu.memory_space<vmem>>, vector<1x64x192xbf16>
    %6 = vector.shape_cast %5 : vector<1x64x192xbf16> to vector<64x192xbf16>
    %cst = arith.constant dense<0.000000e+00> : vector<16x192xf32>
    %7 = tpu.matmul %4, %6, %cst {dimension_numbers = #tpu.dot_dimension_numbers<[1], [0], [0], [1], [0, 0, 1, 1], [], []>} : vector<16x64xbf16>, vector<64x192xbf16>, vector<16x192xf32> -> vector<16x192xf32>
    %c0_5 = arith.constant 0 : index
    %c0_6 = arith.constant 0 : index
    %c0_7 = arith.constant 0 : index
    %8 = vector.load %arg5[%c0_5, %c0_6, %c0_7] : memref<1x1x192xf32, #tpu.memory_space<vmem>>, vector<1x1x192xf32>
    %9 = vector.shape_cast %8 : vector<1x1x192xf32> to vector<1x192xf32>
    %10 = vector.broadcast %9 : vector<1x192xf32> to vector<16x192xf32>
    %11 = arith.addf %7, %10 : vector<16x192xf32>
    %12 = vector.extract_strided_slice %11 {offsets = [0, 0], sizes = [16, 64], strides = [1, 1]} : vector<16x192xf32> to vector<16x64xf32>
    %13 = vector.extract_strided_slice %11 {offsets = [0, 64], sizes = [16, 64], strides = [1, 1]} : vector<16x192xf32> to vector<16x64xf32>
    %14 = vector.extract_strided_slice %11 {offsets = [0, 128], sizes = [16, 64], strides = [1, 1]} : vector<16x192xf32> to vector<16x64xf32>
    %c0_8 = arith.constant 0 : index
    %c0_9 = arith.constant 0 : index
    %15 = vector.load %arg2[%c0_8, %c0_9] : memref<16x16xf32, #tpu.memory_space<vmem>>, vector<16x16xf32>
    %c0_10 = arith.constant 0 : index
    %c0_11 = arith.constant 0 : index
    %16 = vector.load %arg3[%c0_10, %c0_11] : memref<8x64xf32, #tpu.memory_space<vmem>>, vector<8x64xf32>
    %cst_12 = arith.constant 0.000000e+00 : f32
    %17 = vector.broadcast %cst_12 : f32 to vector<16x64xf32>
    %18 = vector.extract_strided_slice %16 {offsets = [0, 0], sizes = [1, 64], strides = [1, 1]} : vector<8x64xf32> to vector<1x64xf32>
    %19 = vector.broadcast %18 : vector<1x64xf32> to vector<16x64xf32>
    %20 = arith.mulf %12, %19 : vector<16x64xf32>
    "tpu.trace_start"() <{level = 10 : i32, message = "nc,mc->nm"}> : () -> ()
    %cst_13 = arith.constant dense<0.000000e+00> : vector<16x16xf32>
    %21 = tpu.matmul %20, %13, %cst_13 {dimension_numbers = #tpu.dot_dimension_numbers<[1], [1], [0], [0], [0, 0, 1, 0], [], []>} : vector<16x64xf32>, vector<16x64xf32>, vector<16x16xf32> -> vector<16x16xf32>
    "tpu.trace_stop"() : () -> ()
    %22 = arith.addf %21, %15 : vector<16x16xf32>
    %cst_14 = arith.constant dense<0xFF800000> : vector<16xf32>
    %23 = vector.multi_reduction <maximumf>, %22, %cst_14 [1] : vector<16x16xf32> to vector<16xf32>
    %24 = vector.shape_cast %23 : vector<16xf32> to vector<16x1xf32>
    %25 = vector.broadcast %24 : vector<16x1xf32> to vector<16x16xf32>
    %26 = arith.subf %22, %25 : vector<16x16xf32>
    %27 = math.exp %26 : vector<16x16xf32>
    %cst_15 = arith.constant dense<0.000000e+00> : vector<16xf32>
    %28 = vector.multi_reduction <add>, %27, %cst_15 [1] : vector<16x16xf32> to vector<16xf32>
    %29 = vector.shape_cast %28 : vector<16xf32> to vector<16x1xf32>
    %30 = tpu.reciprocal %29 {approx = true} : vector<16x1xf32> -> vector<16x1xf32>
    %31 = vector.broadcast %30 : vector<16x1xf32> to vector<16x16xf32>
    %32 = arith.mulf %27, %31 : vector<16x16xf32>
    %33 = vector.broadcast %18 : vector<1x64xf32> to vector<16x64xf32>
    %34 = arith.mulf %14, %33 : vector<16x64xf32>
    %cst_16 = arith.constant dense<0.000000e+00> : vector<16x64xf32>
    %35 = tpu.matmul %32, %34, %cst_16 {dimension_numbers = #tpu.dot_dimension_numbers<[1], [0], [0], [1], [0, 0, 1, 1], [], []>} : vector<16x16xf32>, vector<16x64xf32>, vector<16x64xf32> -> vector<16x64xf32>
    %36 = arith.addf %17, %35 : vector<16x64xf32>
    %37 = vector.extract_strided_slice %16 {offsets = [1, 0], sizes = [1, 64], strides = [1, 1]} : vector<8x64xf32> to vector<1x64xf32>
    %38 = vector.broadcast %37 : vector<1x64xf32> to vector<16x64xf32>
    %39 = arith.mulf %12, %38 : vector<16x64xf32>
    "tpu.trace_start"() <{level = 10 : i32, message = "nc,mc->nm"}> : () -> ()
    %cst_17 = arith.constant dense<0.000000e+00> : vector<16x16xf32>
    %40 = tpu.matmul %39, %13, %cst_17 {dimension_numbers = #tpu.dot_dimension_numbers<[1], [1], [0], [0], [0, 0, 1, 0], [], []>} : vector<16x64xf32>, vector<16x64xf32>, vector<16x16xf32> -> vector<16x16xf32>
    "tpu.trace_stop"() : () -> ()
    %41 = arith.addf %40, %15 : vector<16x16xf32>
    %cst_18 = arith.constant dense<0xFF800000> : vector<16xf32>
    %42 = vector.multi_reduction <maximumf>, %41, %cst_18 [1] : vector<16x16xf32> to vector<16xf32>
    %43 = vector.shape_cast %42 : vector<16xf32> to vector<16x1xf32>
    %44 = vector.broadcast %43 : vector<16x1xf32> to vector<16x16xf32>
    %45 = arith.subf %41, %44 : vector<16x16xf32>
    %46 = math.exp %45 : vector<16x16xf32>
    %cst_19 = arith.constant dense<0.000000e+00> : vector<16xf32>
    %47 = vector.multi_reduction <add>, %46, %cst_19 [1] : vector<16x16xf32> to vector<16xf32>
    %48 = vector.shape_cast %47 : vector<16xf32> to vector<16x1xf32>
    %49 = tpu.reciprocal %48 {approx = true} : vector<16x1xf32> -> vector<16x1xf32>
    %50 = vector.broadcast %49 : vector<16x1xf32> to vector<16x16xf32>
    %51 = arith.mulf %46, %50 : vector<16x16xf32>
    %52 = vector.broadcast %37 : vector<1x64xf32> to vector<16x64xf32>
    %53 = arith.mulf %14, %52 : vector<16x64xf32>
    %cst_20 = arith.constant dense<0.000000e+00> : vector<16x64xf32>
    %54 = tpu.matmul %51, %53, %cst_20 {dimension_numbers = #tpu.dot_dimension_numbers<[1], [0], [0], [1], [0, 0, 1, 1], [], []>} : vector<16x16xf32>, vector<16x64xf32>, vector<16x64xf32> -> vector<16x64xf32>
    %55 = arith.addf %36, %54 : vector<16x64xf32>
    %56 = vector.extract_strided_slice %16 {offsets = [2, 0], sizes = [1, 64], strides = [1, 1]} : vector<8x64xf32> to vector<1x64xf32>
    %57 = vector.broadcast %56 : vector<1x64xf32> to vector<16x64xf32>
    %58 = arith.mulf %12, %57 : vector<16x64xf32>
    "tpu.trace_start"() <{level = 10 : i32, message = "nc,mc->nm"}> : () -> ()
    %cst_21 = arith.constant dense<0.000000e+00> : vector<16x16xf32>
    %59 = tpu.matmul %58, %13, %cst_21 {dimension_numbers = #tpu.dot_dimension_numbers<[1], [1], [0], [0], [0, 0, 1, 0], [], []>} : vector<16x64xf32>, vector<16x64xf32>, vector<16x16xf32> -> vector<16x16xf32>
    "tpu.trace_stop"() : () -> ()
    %60 = arith.addf %59, %15 : vector<16x16xf32>
    %cst_22 = arith.constant dense<0xFF800000> : vector<16xf32>
    %61 = vector.multi_reduction <maximumf>, %60, %cst_22 [1] : vector<16x16xf32> to vector<16xf32>
    %62 = vector.shape_cast %61 : vector<16xf32> to vector<16x1xf32>
    %63 = vector.broadcast %62 : vector<16x1xf32> to vector<16x16xf32>
    %64 = arith.subf %60, %63 : vector<16x16xf32>
    %65 = math.exp %64 : vector<16x16xf32>
    %cst_23 = arith.constant dense<0.000000e+00> : vector<16xf32>
    %66 = vector.multi_reduction <add>, %65, %cst_23 [1] : vector<16x16xf32> to vector<16xf32>
    %67 = vector.shape_cast %66 : vector<16xf32> to vector<16x1xf32>
    %68 = tpu.reciprocal %67 {approx = true} : vector<16x1xf32> -> vector<16x1xf32>
    %69 = vector.broadcast %68 : vector<16x1xf32> to vector<16x16xf32>
    %70 = arith.mulf %65, %69 : vector<16x16xf32>
    %71 = vector.broadcast %56 : vector<1x64xf32> to vector<16x64xf32>
    %72 = arith.mulf %14, %71 : vector<16x64xf32>
    %cst_24 = arith.constant dense<0.000000e+00> : vector<16x64xf32>
    %73 = tpu.matmul %70, %72, %cst_24 {dimension_numbers = #tpu.dot_dimension_numbers<[1], [0], [0], [1], [0, 0, 1, 1], [], []>} : vector<16x16xf32>, vector<16x64xf32>, vector<16x64xf32> -> vector<16x64xf32>
    %74 = arith.addf %55, %73 : vector<16x64xf32>
    %75 = vector.extract_strided_slice %16 {offsets = [3, 0], sizes = [1, 64], strides = [1, 1]} : vector<8x64xf32> to vector<1x64xf32>
    %76 = vector.broadcast %75 : vector<1x64xf32> to vector<16x64xf32>
    %77 = arith.mulf %12, %76 : vector<16x64xf32>
    "tpu.trace_start"() <{level = 10 : i32, message = "nc,mc->nm"}> : () -> ()
    %cst_25 = arith.constant dense<0.000000e+00> : vector<16x16xf32>
    %78 = tpu.matmul %77, %13, %cst_25 {dimension_numbers = #tpu.dot_dimension_numbers<[1], [1], [0], [0], [0, 0, 1, 0], [], []>} : vector<16x64xf32>, vector<16x64xf32>, vector<16x16xf32> -> vector<16x16xf32>
    "tpu.trace_stop"() : () -> ()
    %79 = arith.addf %78, %15 : vector<16x16xf32>
    %cst_26 = arith.constant dense<0xFF800000> : vector<16xf32>
    %80 = vector.multi_reduction <maximumf>, %79, %cst_26 [1] : vector<16x16xf32> to vector<16xf32>
    %81 = vector.shape_cast %80 : vector<16xf32> to vector<16x1xf32>
    %82 = vector.broadcast %81 : vector<16x1xf32> to vector<16x16xf32>
    %83 = arith.subf %79, %82 : vector<16x16xf32>
    %84 = math.exp %83 : vector<16x16xf32>
    %cst_27 = arith.constant dense<0.000000e+00> : vector<16xf32>
    %85 = vector.multi_reduction <add>, %84, %cst_27 [1] : vector<16x16xf32> to vector<16xf32>
    %86 = vector.shape_cast %85 : vector<16xf32> to vector<16x1xf32>
    %87 = tpu.reciprocal %86 {approx = true} : vector<16x1xf32> -> vector<16x1xf32>
    %88 = vector.broadcast %87 : vector<16x1xf32> to vector<16x16xf32>
    %89 = arith.mulf %84, %88 : vector<16x16xf32>
    %90 = vector.broadcast %75 : vector<1x64xf32> to vector<16x64xf32>
    %91 = arith.mulf %14, %90 : vector<16x64xf32>
    %cst_28 = arith.constant dense<0.000000e+00> : vector<16x64xf32>
    %92 = tpu.matmul %89, %91, %cst_28 {dimension_numbers = #tpu.dot_dimension_numbers<[1], [0], [0], [1], [0, 0, 1, 1], [], []>} : vector<16x16xf32>, vector<16x64xf32>, vector<16x64xf32> -> vector<16x64xf32>
    %93 = arith.addf %74, %92 : vector<16x64xf32>
    %94 = vector.extract_strided_slice %16 {offsets = [4, 0], sizes = [1, 64], strides = [1, 1]} : vector<8x64xf32> to vector<1x64xf32>
    %95 = vector.broadcast %94 : vector<1x64xf32> to vector<16x64xf32>
    %96 = arith.mulf %12, %95 : vector<16x64xf32>
    "tpu.trace_start"() <{level = 10 : i32, message = "nc,mc->nm"}> : () -> ()
    %cst_29 = arith.constant dense<0.000000e+00> : vector<16x16xf32>
    %97 = tpu.matmul %96, %13, %cst_29 {dimension_numbers = #tpu.dot_dimension_numbers<[1], [1], [0], [0], [0, 0, 1, 0], [], []>} : vector<16x64xf32>, vector<16x64xf32>, vector<16x16xf32> -> vector<16x16xf32>
    "tpu.trace_stop"() : () -> ()
    %98 = arith.addf %97, %15 : vector<16x16xf32>
    %cst_30 = arith.constant dense<0xFF800000> : vector<16xf32>
    %99 = vector.multi_reduction <maximumf>, %98, %cst_30 [1] : vector<16x16xf32> to vector<16xf32>
    %100 = vector.shape_cast %99 : vector<16xf32> to vector<16x1xf32>
    %101 = vector.broadcast %100 : vector<16x1xf32> to vector<16x16xf32>
    %102 = arith.subf %98, %101 : vector<16x16xf32>
    %103 = math.exp %102 : vector<16x16xf32>
    %cst_31 = arith.constant dense<0.000000e+00> : vector<16xf32>
    %104 = vector.multi_reduction <add>, %103, %cst_31 [1] : vector<16x16xf32> to vector<16xf32>
    %105 = vector.shape_cast %104 : vector<16xf32> to vector<16x1xf32>
    %106 = tpu.reciprocal %105 {approx = true} : vector<16x1xf32> -> vector<16x1xf32>
    %107 = vector.broadcast %106 : vector<16x1xf32> to vector<16x16xf32>
    %108 = arith.mulf %103, %107 : vector<16x16xf32>
    %109 = vector.broadcast %94 : vector<1x64xf32> to vector<16x64xf32>
    %110 = arith.mulf %14, %109 : vector<16x64xf32>
    %cst_32 = arith.constant dense<0.000000e+00> : vector<16x64xf32>
    %111 = tpu.matmul %108, %110, %cst_32 {dimension_numbers = #tpu.dot_dimension_numbers<[1], [0], [0], [1], [0, 0, 1, 1], [], []>} : vector<16x16xf32>, vector<16x64xf32>, vector<16x64xf32> -> vector<16x64xf32>
    %112 = arith.addf %93, %111 : vector<16x64xf32>
    %113 = vector.extract_strided_slice %16 {offsets = [5, 0], sizes = [1, 64], strides = [1, 1]} : vector<8x64xf32> to vector<1x64xf32>
    %114 = vector.broadcast %113 : vector<1x64xf32> to vector<16x64xf32>
    %115 = arith.mulf %12, %114 : vector<16x64xf32>
    "tpu.trace_start"() <{level = 10 : i32, message = "nc,mc->nm"}> : () -> ()
    %cst_33 = arith.constant dense<0.000000e+00> : vector<16x16xf32>
    %116 = tpu.matmul %115, %13, %cst_33 {dimension_numbers = #tpu.dot_dimension_numbers<[1], [1], [0], [0], [0, 0, 1, 0], [], []>} : vector<16x64xf32>, vector<16x64xf32>, vector<16x16xf32> -> vector<16x16xf32>
    "tpu.trace_stop"() : () -> ()
    %117 = arith.addf %116, %15 : vector<16x16xf32>
    %cst_34 = arith.constant dense<0xFF800000> : vector<16xf32>
    %118 = vector.multi_reduction <maximumf>, %117, %cst_34 [1] : vector<16x16xf32> to vector<16xf32>
    %119 = vector.shape_cast %118 : vector<16xf32> to vector<16x1xf32>
    %120 = vector.broadcast %119 : vector<16x1xf32> to vector<16x16xf32>
    %121 = arith.subf %117, %120 : vector<16x16xf32>
    %122 = math.exp %121 : vector<16x16xf32>
    %cst_35 = arith.constant dense<0.000000e+00> : vector<16xf32>
    %123 = vector.multi_reduction <add>, %122, %cst_35 [1] : vector<16x16xf32> to vector<16xf32>
    %124 = vector.shape_cast %123 : vector<16xf32> to vector<16x1xf32>
    %125 = tpu.reciprocal %124 {approx = true} : vector<16x1xf32> -> vector<16x1xf32>
    %126 = vector.broadcast %125 : vector<16x1xf32> to vector<16x16xf32>
    %127 = arith.mulf %122, %126 : vector<16x16xf32>
    %128 = vector.broadcast %113 : vector<1x64xf32> to vector<16x64xf32>
    %129 = arith.mulf %14, %128 : vector<16x64xf32>
    %cst_36 = arith.constant dense<0.000000e+00> : vector<16x64xf32>
    %130 = tpu.matmul %127, %129, %cst_36 {dimension_numbers = #tpu.dot_dimension_numbers<[1], [0], [0], [1], [0, 0, 1, 1], [], []>} : vector<16x16xf32>, vector<16x64xf32>, vector<16x64xf32> -> vector<16x64xf32>
    %131 = arith.addf %112, %130 : vector<16x64xf32>
    %132 = vector.extract_strided_slice %16 {offsets = [6, 0], sizes = [1, 64], strides = [1, 1]} : vector<8x64xf32> to vector<1x64xf32>
    %133 = vector.broadcast %132 : vector<1x64xf32> to vector<16x64xf32>
    %134 = arith.mulf %12, %133 : vector<16x64xf32>
    "tpu.trace_start"() <{level = 10 : i32, message = "nc,mc->nm"}> : () -> ()
    %cst_37 = arith.constant dense<0.000000e+00> : vector<16x16xf32>
    %135 = tpu.matmul %134, %13, %cst_37 {dimension_numbers = #tpu.dot_dimension_numbers<[1], [1], [0], [0], [0, 0, 1, 0], [], []>} : vector<16x64xf32>, vector<16x64xf32>, vector<16x16xf32> -> vector<16x16xf32>
    "tpu.trace_stop"() : () -> ()
    %136 = arith.addf %135, %15 : vector<16x16xf32>
    %cst_38 = arith.constant dense<0xFF800000> : vector<16xf32>
    %137 = vector.multi_reduction <maximumf>, %136, %cst_38 [1] : vector<16x16xf32> to vector<16xf32>
    %138 = vector.shape_cast %137 : vector<16xf32> to vector<16x1xf32>
    %139 = vector.broadcast %138 : vector<16x1xf32> to vector<16x16xf32>
    %140 = arith.subf %136, %139 : vector<16x16xf32>
    %141 = math.exp %140 : vector<16x16xf32>
    %cst_39 = arith.constant dense<0.000000e+00> : vector<16xf32>
    %142 = vector.multi_reduction <add>, %141, %cst_39 [1] : vector<16x16xf32> to vector<16xf32>
    %143 = vector.shape_cast %142 : vector<16xf32> to vector<16x1xf32>
    %144 = tpu.reciprocal %143 {approx = true} : vector<16x1xf32> -> vector<16x1xf32>
    %145 = vector.broadcast %144 : vector<16x1xf32> to vector<16x16xf32>
    %146 = arith.mulf %141, %145 : vector<16x16xf32>
    %147 = vector.broadcast %132 : vector<1x64xf32> to vector<16x64xf32>
    %148 = arith.mulf %14, %147 : vector<16x64xf32>
    %cst_40 = arith.constant dense<0.000000e+00> : vector<16x64xf32>
    %149 = tpu.matmul %146, %148, %cst_40 {dimension_numbers = #tpu.dot_dimension_numbers<[1], [0], [0], [1], [0, 0, 1, 1], [], []>} : vector<16x16xf32>, vector<16x64xf32>, vector<16x64xf32> -> vector<16x64xf32>
    %150 = arith.addf %131, %149 : vector<16x64xf32>
    %151 = vector.extract_strided_slice %16 {offsets = [7, 0], sizes = [1, 64], strides = [1, 1]} : vector<8x64xf32> to vector<1x64xf32>
    %152 = vector.broadcast %151 : vector<1x64xf32> to vector<16x64xf32>
    %153 = arith.mulf %12, %152 : vector<16x64xf32>
    "tpu.trace_start"() <{level = 10 : i32, message = "nc,mc->nm"}> : () -> ()
    %cst_41 = arith.constant dense<0.000000e+00> : vector<16x16xf32>
    %154 = tpu.matmul %153, %13, %cst_41 {dimension_numbers = #tpu.dot_dimension_numbers<[1], [1], [0], [0], [0, 0, 1, 0], [], []>} : vector<16x64xf32>, vector<16x64xf32>, vector<16x16xf32> -> vector<16x16xf32>
    "tpu.trace_stop"() : () -> ()
    %155 = arith.addf %154, %15 : vector<16x16xf32>
    %cst_42 = arith.constant dense<0xFF800000> : vector<16xf32>
    %156 = vector.multi_reduction <maximumf>, %155, %cst_42 [1] : vector<16x16xf32> to vector<16xf32>
    %157 = vector.shape_cast %156 : vector<16xf32> to vector<16x1xf32>
    %158 = vector.broadcast %157 : vector<16x1xf32> to vector<16x16xf32>
    %159 = arith.subf %155, %158 : vector<16x16xf32>
    %160 = math.exp %159 : vector<16x16xf32>
    %cst_43 = arith.constant dense<0.000000e+00> : vector<16xf32>
    %161 = vector.multi_reduction <add>, %160, %cst_43 [1] : vector<16x16xf32> to vector<16xf32>
    %162 = vector.shape_cast %161 : vector<16xf32> to vector<16x1xf32>
    %163 = tpu.reciprocal %162 {approx = true} : vector<16x1xf32> -> vector<16x1xf32>
    %164 = vector.broadcast %163 : vector<16x1xf32> to vector<16x16xf32>
    %165 = arith.mulf %160, %164 : vector<16x16xf32>
    %166 = vector.broadcast %151 : vector<1x64xf32> to vector<16x64xf32>
    %167 = arith.mulf %14, %166 : vector<16x64xf32>
    %cst_44 = arith.constant dense<0.000000e+00> : vector<16x64xf32>
    %168 = tpu.matmul %165, %167, %cst_44 {dimension_numbers = #tpu.dot_dimension_numbers<[1], [0], [0], [1], [0, 0, 1, 1], [], []>} : vector<16x16xf32>, vector<16x64xf32>, vector<16x64xf32> -> vector<16x64xf32>
    %169 = arith.addf %150, %168 : vector<16x64xf32>
    %170 = arith.truncf %169 : vector<16x64xf32> to vector<16x64xbf16>
    %c0_45 = arith.constant 0 : index
    %c0_46 = arith.constant 0 : index
    %c0_47 = arith.constant 0 : index
    %171 = vector.load %arg6[%c0_45, %c0_46, %c0_47] : memref<1x64x64xbf16, #tpu.memory_space<vmem>>, vector<1x64x64xbf16>
    %172 = vector.shape_cast %171 : vector<1x64x64xbf16> to vector<64x64xbf16>
    %cst_48 = arith.constant dense<0.000000e+00> : vector<16x64xf32>
    %173 = tpu.matmul %170, %172, %cst_48 {dimension_numbers = #tpu.dot_dimension_numbers<[1], [0], [0], [1], [0, 0, 1, 1], [], []>} : vector<16x64xbf16>, vector<64x64xbf16>, vector<16x64xf32> -> vector<16x64xf32>
    %c0_49 = arith.constant 0 : index
    %c0_50 = arith.constant 0 : index
    %c0_51 = arith.constant 0 : index
    %174 = vector.load %arg7[%c0_49, %c0_50, %c0_51] : memref<1x1x64xf32, #tpu.memory_space<vmem>>, vector<1x1x64xf32>
    %175 = vector.shape_cast %174 : vector<1x1x64xf32> to vector<1x64xf32>
    %176 = vector.broadcast %175 : vector<1x64xf32> to vector<16x64xf32>
    %177 = arith.addf %173, %176 : vector<16x64xf32>
    %178 = arith.addf %3, %177 : vector<16x64xf32>
    %c0_52 = arith.constant 0 : index
    %c0_53 = arith.constant 0 : index
    %c0_54 = arith.constant 0 : index
    %179 = vector.load %arg8[%c0_52, %c0_53, %c0_54] : memref<1x1x64xf32, #tpu.memory_space<vmem>>, vector<1x1x64xf32>
    %180 = vector.shape_cast %179 : vector<1x1x64xf32> to vector<1x64xf32>
    %c0_55 = arith.constant 0 : index
    %c0_56 = arith.constant 0 : index
    %c0_57 = arith.constant 0 : index
    %181 = vector.load %arg9[%c0_55, %c0_56, %c0_57] : memref<1x1x64xf32, #tpu.memory_space<vmem>>, vector<1x1x64xf32>
    %182 = vector.shape_cast %181 : vector<1x1x64xf32> to vector<1x64xf32>
    %cst_58 = arith.constant dense<0.000000e+00> : vector<16xf32>
    %183 = vector.multi_reduction <add>, %178, %cst_58 [1] : vector<16x64xf32> to vector<16xf32>
    %184 = vector.shape_cast %183 : vector<16xf32> to vector<16x1xf32>
    %cst_59 = arith.constant 6.400000e+01 : f32
    %185 = vector.broadcast %cst_59 : f32 to vector<16x1xf32>
    %186 = arith.divf %184, %185 : vector<16x1xf32>
    %187 = vector.broadcast %186 : vector<16x1xf32> to vector<16x64xf32>
    %188 = arith.subf %178, %187 : vector<16x64xf32>
    %189 = arith.mulf %188, %188 : vector<16x64xf32>
    %cst_60 = arith.constant dense<0.000000e+00> : vector<16xf32>
    %190 = vector.multi_reduction <add>, %189, %cst_60 [1] : vector<16x64xf32> to vector<16xf32>
    %191 = vector.shape_cast %190 : vector<16xf32> to vector<16x1xf32>
    %cst_61 = arith.constant 6.400000e+01 : f32
    %192 = vector.broadcast %cst_61 : f32 to vector<16x1xf32>
    %193 = arith.divf %191, %192 : vector<16x1xf32>
    %cst_62 = arith.constant 9.99999974E-6 : f32
    %194 = vector.broadcast %cst_62 : f32 to vector<16x1xf32>
    %195 = arith.addf %193, %194 : vector<16x1xf32>
    %196 = math.rsqrt %195 : vector<16x1xf32>
    %197 = vector.broadcast %186 : vector<16x1xf32> to vector<16x64xf32>
    %198 = arith.subf %178, %197 : vector<16x64xf32>
    %199 = vector.broadcast %196 : vector<16x1xf32> to vector<16x64xf32>
    %200 = arith.mulf %198, %199 : vector<16x64xf32>
    %201 = vector.broadcast %180 : vector<1x64xf32> to vector<16x64xf32>
    %202 = arith.mulf %200, %201 : vector<16x64xf32>
    %203 = vector.broadcast %182 : vector<1x64xf32> to vector<16x64xf32>
    %204 = arith.addf %202, %203 : vector<16x64xf32>
    %205 = arith.truncf %204 : vector<16x64xf32> to vector<16x64xbf16>
    %c0_63 = arith.constant 0 : index
    %c0_64 = arith.constant 0 : index
    %c0_65 = arith.constant 0 : index
    %206 = vector.load %arg10[%c0_63, %c0_64, %c0_65] : memref<1x64x256xbf16, #tpu.memory_space<vmem>>, vector<1x64x256xbf16>
    %207 = vector.shape_cast %206 : vector<1x64x256xbf16> to vector<64x256xbf16>
    %cst_66 = arith.constant dense<0.000000e+00> : vector<16x256xf32>
    %208 = tpu.matmul %205, %207, %cst_66 {dimension_numbers = #tpu.dot_dimension_numbers<[1], [0], [0], [1], [0, 0, 1, 1], [], []>} : vector<16x64xbf16>, vector<64x256xbf16>, vector<16x256xf32> -> vector<16x256xf32>
    %c0_67 = arith.constant 0 : index
    %c0_68 = arith.constant 0 : index
    %c0_69 = arith.constant 0 : index
    %209 = vector.load %arg11[%c0_67, %c0_68, %c0_69] : memref<1x1x256xf32, #tpu.memory_space<vmem>>, vector<1x1x256xf32>
    %210 = vector.shape_cast %209 : vector<1x1x256xf32> to vector<1x256xf32>
    %211 = vector.broadcast %210 : vector<1x256xf32> to vector<16x256xf32>
    %212 = arith.addf %208, %211 : vector<16x256xf32>
    %cst_70 = arith.constant 0.000000e+00 : f32
    %213 = vector.broadcast %cst_70 : f32 to vector<16x256xf32>
    %214 = arith.maximumf %212, %213 : vector<16x256xf32>
    %215 = arith.truncf %214 : vector<16x256xf32> to vector<16x256xbf16>
    %c0_71 = arith.constant 0 : index
    %c0_72 = arith.constant 0 : index
    %c0_73 = arith.constant 0 : index
    %216 = vector.load %arg12[%c0_71, %c0_72, %c0_73] : memref<1x256x64xbf16, #tpu.memory_space<vmem>>, vector<1x256x64xbf16>
    %217 = vector.shape_cast %216 : vector<1x256x64xbf16> to vector<256x64xbf16>
    %cst_74 = arith.constant dense<0.000000e+00> : vector<16x64xf32>
    %218 = tpu.matmul %215, %217, %cst_74 {dimension_numbers = #tpu.dot_dimension_numbers<[1], [0], [0], [1], [0, 0, 1, 1], [], []>} : vector<16x256xbf16>, vector<256x64xbf16>, vector<16x64xf32> -> vector<16x64xf32>
    %c0_75 = arith.constant 0 : index
    %c0_76 = arith.constant 0 : index
    %c0_77 = arith.constant 0 : index
    %219 = vector.load %arg13[%c0_75, %c0_76, %c0_77] : memref<1x1x64xf32, #tpu.memory_space<vmem>>, vector<1x1x64xf32>
    %220 = vector.shape_cast %219 : vector<1x1x64xf32> to vector<1x64xf32>
    %221 = vector.broadcast %220 : vector<1x64xf32> to vector<16x64xf32>
    %222 = arith.addf %218, %221 : vector<16x64xf32>
    %223 = arith.addf %222, %222 : vector<16x64xf32>
    %c0_78 = arith.constant 0 : index
    %c0_79 = arith.constant 0 : index
    %c0_80 = arith.constant 0 : index
    %224 = vector.load %arg14[%c0_78, %c0_79, %c0_80] : memref<1x1x64xf32, #tpu.memory_space<vmem>>, vector<1x1x64xf32>
    %225 = vector.shape_cast %224 : vector<1x1x64xf32> to vector<1x64xf32>
    %c0_81 = arith.constant 0 : index
    %c0_82 = arith.constant 0 : index
    %c0_83 = arith.constant 0 : index
    %226 = vector.load %arg15[%c0_81, %c0_82, %c0_83] : memref<1x1x64xf32, #tpu.memory_space<vmem>>, vector<1x1x64xf32>
    %227 = vector.shape_cast %226 : vector<1x1x64xf32> to vector<1x64xf32>
    %cst_84 = arith.constant dense<0.000000e+00> : vector<16xf32>
    %228 = vector.multi_reduction <add>, %223, %cst_84 [1] : vector<16x64xf32> to vector<16xf32>
    %229 = vector.shape_cast %228 : vector<16xf32> to vector<16x1xf32>
    %cst_85 = arith.constant 6.400000e+01 : f32
    %230 = vector.broadcast %cst_85 : f32 to vector<16x1xf32>
    %231 = arith.divf %229, %230 : vector<16x1xf32>
    %232 = vector.broadcast %231 : vector<16x1xf32> to vector<16x64xf32>
    %233 = arith.subf %223, %232 : vector<16x64xf32>
    %234 = arith.mulf %233, %233 : vector<16x64xf32>
    %cst_86 = arith.constant dense<0.000000e+00> : vector<16xf32>
    %235 = vector.multi_reduction <add>, %234, %cst_86 [1] : vector<16x64xf32> to vector<16xf32>
    %236 = vector.shape_cast %235 : vector<16xf32> to vector<16x1xf32>
    %cst_87 = arith.constant 6.400000e+01 : f32
    %237 = vector.broadcast %cst_87 : f32 to vector<16x1xf32>
    %238 = arith.divf %236, %237 : vector<16x1xf32>
    %cst_88 = arith.constant 9.99999974E-6 : f32
    %239 = vector.broadcast %cst_88 : f32 to vector<16x1xf32>
    %240 = arith.addf %238, %239 : vector<16x1xf32>
    %241 = math.rsqrt %240 : vector<16x1xf32>
    %242 = vector.broadcast %231 : vector<16x1xf32> to vector<16x64xf32>
    %243 = arith.subf %223, %242 : vector<16x64xf32>
    %244 = vector.broadcast %241 : vector<16x1xf32> to vector<16x64xf32>
    %245 = arith.mulf %243, %244 : vector<16x64xf32>
    %246 = vector.broadcast %225 : vector<1x64xf32> to vector<16x64xf32>
    %247 = arith.mulf %245, %246 : vector<16x64xf32>
    %248 = vector.broadcast %227 : vector<1x64xf32> to vector<16x64xf32>
    %249 = arith.addf %247, %248 : vector<16x64xf32>
    %c0_89 = arith.constant 0 : index
    %c0_90 = arith.constant 0 : index
    %250 = vector.load %arg19[%c0_89, %c0_90] : memref<16x64xf32, #tpu.memory_space<vmem>>, vector<16x64xf32>
    tpu.vector_store %arg19[%c0_89, %c0_90], %249 {strides = array<i32>} : memref<16x64xf32, #tpu.memory_space<vmem>>, vector<16x64xf32>,
    %c5_i32 = arith.constant 5 : i32
    %251 = arith.cmpi eq, %arg0, %c5_i32 : i32
    %252 = arith.extui %251 : i1 to i32
    %c0_i32_91 = arith.constant 0 : i32
    %253 = arith.cmpi ne, %252, %c0_i32_91 : i32
    scf.if %253 {
      %254 = arith.truncf %249 : vector<16x64xf32> to vector<16x64xbf16>
      %c0_92 = arith.constant 0 : index
      %c0_93 = arith.constant 0 : index
      %255 = vector.load %arg16[%c0_92, %c0_93] : memref<64x128xbf16, #tpu.memory_space<vmem>>, vector<64x128xbf16>
      %cst_94 = arith.constant dense<0.000000e+00> : vector<16x128xf32>
      %256 = tpu.matmul %254, %255, %cst_94 {dimension_numbers = #tpu.dot_dimension_numbers<[1], [0], [0], [1], [0, 0, 1, 1], [], []>} : vector<16x64xbf16>, vector<64x128xbf16>, vector<16x128xf32> -> vector<16x128xf32>
      %c0_95 = arith.constant 0 : index
      %c0_96 = arith.constant 0 : index
      %257 = vector.load %arg17[%c0_95, %c0_96] : memref<1x128xf32, #tpu.memory_space<vmem>>, vector<1x128xf32>
      %258 = vector.broadcast %257 : vector<1x128xf32> to vector<16x128xf32>
      %259 = arith.addf %256, %258 : vector<16x128xf32>
      %c0_97 = arith.constant 0 : index
      %c0_98 = arith.constant 0 : index
      %260 = vector.load %arg18[%c0_97, %c0_98] : memref<16x128xf32, #tpu.memory_space<vmem>>, vector<16x128xf32>
      tpu.vector_store %arg18[%c0_97, %c0_98], %259 {strides = array<i32>} : memref<16x128xf32, #tpu.memory_space<vmem>>, vector<16x128xf32>,
    } else {
    }
    return
  }
  func.func @transform_0(%arg0: i32) -> (i32, i32) {
    %c0_i32 = arith.constant 0 : i32
    %c0_i32_0 = arith.constant 0 : i32
    %c0_i32_1 = arith.constant 0 : i32
    return %c0_i32, %c0_i32_0 : i32, i32
  }
  func.func @transform_1(%arg0: i32) -> (i32, i32) {
    %c0_i32 = arith.constant 0 : i32
    %c0_i32_0 = arith.constant 0 : i32
    %c0_i32_1 = arith.constant 0 : i32
    return %c0_i32, %c0_i32_0 : i32, i32
  }
  func.func @transform_2(%arg0: i32) -> (i32, i32) {
    %c0_i32 = arith.constant 0 : i32
    %c0_i32_0 = arith.constant 0 : i32
    %c0_i32_1 = arith.constant 0 : i32
    return %c0_i32, %c0_i32_0 : i32, i32
  }
  func.func @transform_3(%arg0: i32) -> (i32, i32, i32) {
    %c0_i32 = arith.constant 0 : i32
    %c0_i32_0 = arith.constant 0 : i32
    %c0_i32_1 = arith.constant 0 : i32
    return %arg0, %c0_i32, %c0_i32_0 : i32, i32, i32
  }
  func.func @transform_4(%arg0: i32) -> (i32, i32, i32) {
    %c0_i32 = arith.constant 0 : i32
    %c0_i32_0 = arith.constant 0 : i32
    %c0_i32_1 = arith.constant 0 : i32
    return %arg0, %c0_i32, %c0_i32_0 : i32, i32, i32
  }
  func.func @transform_5(%arg0: i32) -> (i32, i32, i32) {
    %c0_i32 = arith.constant 0 : i32
    %c0_i32_0 = arith.constant 0 : i32
    %c0_i32_1 = arith.constant 0 : i32
    return %arg0, %c0_i32, %c0_i32_0 : i32, i32, i32
  }
  func.func @transform_6(%arg0: i32) -> (i32, i32, i32) {
    %c0_i32 = arith.constant 0 : i32
    %c0_i32_0 = arith.constant 0 : i32
    %c0_i32_1 = arith.constant 0 : i32
    return %arg0, %c0_i32, %c0_i32_0 : i32, i32, i32
  }
  func.func @transform_7(%arg0: i32) -> (i32, i32, i32) {
    %c0_i32 = arith.constant 0 : i32
    %c0_i32_0 = arith.constant 0 : i32
    %c0_i32_1 = arith.constant 0 : i32
    return %arg0, %c0_i32, %c0_i32_0 : i32, i32, i32
  }
  func.func @transform_8(%arg0: i32) -> (i32, i32, i32) {
    %c0_i32 = arith.constant 0 : i32
    %c0_i32_0 = arith.constant 0 : i32
    %c0_i32_1 = arith.constant 0 : i32
    return %arg0, %c0_i32, %c0_i32_0 : i32, i32, i32
  }
  func.func @transform_9(%arg0: i32) -> (i32, i32, i32) {
    %c0_i32 = arith.constant 0 : i32
    %c0_i32_0 = arith.constant 0 : i32
    %c0_i32_1 = arith.constant 0 : i32
    return %arg0, %c0_i32, %c0_i32_0 : i32, i32, i32
  }
  func.func @transform_10(%arg0: i32) -> (i32, i32, i32) {
    %c0_i32 = arith.constant 0 : i32
    %c0_i32_0 = arith.constant 0 : i32
    %c0_i32_1 = arith.constant 0 : i32
    return %arg0, %c0_i32, %c0_i32_0 : i32, i32, i32
  }
  func.func @transform_11(%arg0: i32) -> (i32, i32, i32) {
    %c0_i32 = arith.constant 0 : i32
    %c0_i32_0 = arith.constant 0 : i32
    %c0_i32_1 = arith.constant 0 : i32
    return %arg0, %c0_i32, %c0_i32_0 : i32, i32, i32
  }
  func.func @transform_12(%arg0: i32) -> (i32, i32, i32) {
    %c0_i32 = arith.constant 0 : i32
    %c0_i32_0 = arith.constant 0 : i32
    %c0_i32_1 = arith.constant 0 : i32
    return %arg0, %c0_i32, %c0_i32_0 : i32, i32, i32
  }
  func.func @transform_13(%arg0: i32) -> (i32, i32, i32) {
    %c0_i32 = arith.constant 0 : i32
    %c0_i32_0 = arith.constant 0 : i32
    %c0_i32_1 = arith.constant 0 : i32
    return %arg0, %c0_i32, %c0_i32_0 : i32, i32, i32
  }
  func.func @transform_14(%arg0: i32) -> (i32, i32, i32) {
    %c0_i32 = arith.constant 0 : i32
    %c0_i32_0 = arith.constant 0 : i32
    %c0_i32_1 = arith.constant 0 : i32
    return %arg0, %c0_i32, %c0_i32_0 : i32, i32, i32
  }
  func.func @transform_15(%arg0: i32) -> (i32, i32) {
    %c0_i32 = arith.constant 0 : i32
    %c0_i32_0 = arith.constant 0 : i32
    %c0_i32_1 = arith.constant 0 : i32
    return %c0_i32, %c0_i32_0 : i32, i32
  }
  func.func @transform_16(%arg0: i32) -> (i32, i32) {
    %c0_i32 = arith.constant 0 : i32
    %c0_i32_0 = arith.constant 0 : i32
    %c0_i32_1 = arith.constant 0 : i32
    return %c0_i32, %c0_i32_0 : i32, i32
  }
  func.func @transform_17(%arg0: i32) -> (i32, i32) {
    %c0_i32 = arith.constant 0 : i32
    %c0_i32_0 = arith.constant 0 : i32
    %c0_i32_1 = arith.constant 0 : i32
    return %c0_i32, %c0_i32_0 : i32, i32
  }
}

</mosaic_0001>

<bundles_post_ra>
// kernel: transformer_forward.1
= control target key start
LH: loop header
LB: loop body
LE: loop exit
PB: predicated region body
PF: predicated region fallthrough
CT: control target
= control target key end

     0   :  { %s4211_s0 = inlined_call_operand.vmem [shape: f32[16,64], index: 0, kind: input, shape index: {}]   ;;  %s4212_s1 = inlined_call_operand.vmem [shape: f32[16,16], index: 1, kind: input, shape index: {}]   ;;  %s4213_s2 = inlined_call_operand.vmem [shape: f32[8,64], index: 2, kind: input, shape index: {}]   ;;  %s4214_s3 = inlined_call_operand.vmem [shape: bf16[6,64,192], index: 3, kind: input, shape index: {}]   ;;  %s4215_s4 = inlined_call_operand.vmem [shape: f32[6,1,192], index: 4, kind: input, shape index: {}]   ;;  %s4216_s5 = inlined_call_operand.vmem [shape: bf16[6,64,64], index: 5, kind: input, shape index: {}]   ;;  %s4217_s6 = inlined_call_operand.vmem [shape: f32[6,1,64], index: 6, kind: input, shape index: {}]   ;;  %s4218_s7 = inlined_call_operand.vmem [shape: f32[6,1,64], index: 7, kind: input, shape index: {}]   ;;  %s4219_s8 = inlined_call_operand.vmem [shape: f32[6,1,64], index: 8, kind: input, shape index: {}]   ;;  %s4220_s9 = inlined_call_operand.vmem [shape: bf16[6,64,256], index: 9, kind: input, shape index: {}]   ;;  %s4221_s10 = inlined_call_operand.vmem [shape: f32[6,1,256], index: 10, kind: input, shape index: {}]   ;;  %s4222_s11 = inlined_call_operand.vmem [shape: bf16[6,256,64], index: 11, kind: input, shape index: {}]   ;;  %s4223_s12 = inlined_call_operand.vmem [shape: f32[6,1,64], index: 12, kind: input, shape index: {}]   ;;  %s4224_s13 = inlined_call_operand.vmem [shape: f32[6,1,64], index: 13, kind: input, shape index: {}]   ;;  %s4225_s14 = inlined_call_operand.vmem [shape: f32[6,1,64], index: 14, kind: input, shape index: {}]   ;;  %s4226_s15 = inlined_call_operand.vmem [shape: bf16[64,128], index: 15, kind: input, shape index: {}]   ;;  %s4227_s16 = inlined_call_operand.vmem [shape: f32[1,128], index: 16, kind: input, shape index: {}]   ;;  %s4228_s17 = inlined_call_operand.hbm [shape: f32[16,128], index: 17, kind: output, shape index: {}]  }
   0x1   :  { %4233 = sst [smem:[#allocation8_spill]] %s4211_s0 }
   0x2   :  { %4234 = sst [smem:[#allocation9_spill]] %s4212_s1 }
   0x3   :  { %4235 = sst [smem:[#allocation10_spill]] %s4213_s2 }
   0x4   :  { %4236 = sst [smem:[#allocation11_spill]] %s4214_s3 }
   0x5   :  { %4237 = sst [smem:[#allocation12_spill]] %s4215_s4 }
   0x6   :  { %4238 = sst [smem:[#allocation13_spill]] %s4216_s5 }
   0x7   :  { %4239 = sst [smem:[#allocation14_spill]] %s4226_s15 }
   0x8   :  { %4240 = sst [smem:[#allocation15_spill]] %s4227_s16 }
   0x9   :  { %4241 = sst [smem:[#allocation16_spill]] %s4228_s17 }
   0xa   :  { %22 = vsyncpa [#allocation4], 0  ;;  %s3748_s24 = smov 0  }
   0xb LB: > { %4242 = sst [smem:[#allocation6_spill]] %s3647_s24  ;;  %s3754_s25 = sadd.s32 4294967295, %s3647_s24   ;;  %s3647_s24 = sphi %s3748_s24, %s28_s24  }
   0xc   : > { %p3118_p0 = scmp.ge.s32.totalorder %s3647_s24, 1  ;;  %p579_p1 = scmp.lt.s32.totalorder %s3647_s24, 7 }
   0xe   : > { %p580_p2 = pnand %p3118_p0, %p579_p1 }
  0x10   : > { %583 = sbr.rel (%p580_p2) target bundleno = 5681 (0x1631), region = 88 }
  0x15   : > { %p667_p3 = scmp.lt.s32.totalorder %s3754_s25, 5  ;;  %s4243_s3 = sld [smem:[#allocation11_spill]] }
  0x16   : > { %s4244_s4 = sld [smem:[#allocation12_spill]]  ;;  %p3129_p4 = scmp.ne.s32.totalorder %s3754_s25, 0 }
  0x17   : > { %s3760_s26 = scalar_select %p667_p3, %s3754_s25, 5 }
  0x18   : > { %s4246_s5 = sld [smem:[#allocation13_spill]] }
  0x19   : > { %s3234_s27 = sshll.u32 %s3760_s26, 6  ;;  %s3121_s28 = sshll.u32 %s3760_s26, 1 }
  0x1a   : > { %s3235_s20 = sshll.u32 %s3760_s26, 5  ;;  %s3800_s23 = scalar_lea.vmem %s4221_s10, %s3121_s28 }
  0x1b   : > { %s3767_s30 = scalar_lea.vmem %s4243_s3, %s3234_s27  ;;  %s3237_s17 = sshll.u32 %s3760_s26, 7 }
  0x1c   : > { %s3772_s1 = scalar_lea.vmem %s4244_s4, %s3121_s28  ;;  %s3806_s2 = scalar_lea.vmem %s4222_s11, %s3237_s17 }
  0x1d   : > { %4245 = sst [smem:[#allocation7_spill]] %s3772_s1  ;;  %s3795_s1 = scalar_lea.vmem %s4220_s9, %s3234_s27 }
  0x1e   : > { %s3782_s16 = scalar_lea.vmem %s4246_s5, %s3235_s20  ;;  %s706_s3 = scalar_lea.vmem %s4223_s12, %s3760_s26 }
  0x1f   : > { %s709_s4 = scalar_lea.vmem %s4224_s13, %s3760_s26  ;;  %s712_s21 = scalar_lea.vmem %s4225_s14, %s3760_s26 }
  0x20   : > { %717 = sbr.rel (%p3129_p4) target bundleno = 41 (0x29), region = 92  ;;  %s4247_s24 = sld [smem:[#allocation8_spill]] (!%p3129_p4) }
  0x25   : > { %vm720_vm0 = vcmask 523264  }
  0x26   : > { %s4248_s20 = smov %s4247_s24  ;;  %v718_v0 = vld [vmem:[%s4247_s24] sm:$0xff] }
  0x27   : > { %v719_v1 = vld [vmem:[%s4248_s20 + $0x8] sm:$0xff]  ;;  %721 = vst.msk [vmem:[#allocation2] sm:$0xff] %vm720_vm0, %v718_v0 }
  0x28   : > { %722 = vst.msk [vmem:[#allocation2 + $0x8] sm:$0xff] %vm720_vm0, %v719_v1 }
  0x29 PF: > { %v3493_v2 = vld [vmem:[%s3767_s30 + $0x34] ss:$8 sps:$4 sm:$0xff]   ;;  %v3495_v3 = vld [vmem:[%s3767_s30 + $0x30] ss:$8 sps:$4 sm:$0xff]   ;;  %v3649_v4 = vmov 0   ;;  %s4249_s5 = sld [smem:[#allocation7_spill]]  ;;  %v736_v14 = vlaneseq }
  0x2a   : > { %822 = vmatprep.mubr.bf16.mxu0 %v3649_v4  ;;  %798 = vmatprep.subr.bf16.mxu0 %v3493_v2  ;;  %v3496_v5 = vld [vmem:[%s3767_s30 + $0x24] ss:$8 sps:$4 sm:$0xff]   ;;  %v3498_v6 = vld [vmem:[%s3767_s30 + $0x20] ss:$8 sps:$4 sm:$0xff]   ;;  %v3499_v7 = vld [vmem:[%s3767_s30 + $0x14] ss:$8 sps:$4 sm:$0xff]  }
  0x2b   : > { %799 = vmatpush1.bf16.msra.mxu0 %v3495_v3  ;;  %v3501_v8 = vld [vmem:[%s3767_s30 + $0x10] ss:$8 sps:$4 sm:$0xff]   ;;  %v3502_v9 = vld [vmem:[%s3767_s30 + $0x4] ss:$8 sps:$4 sm:$0xff]   ;;  %v3504_v10 = vld [vmem:[%s3767_s30] ss:$8 sps:$4 sm:$0xff]   ;;  %s4253_s30 = scalar_lea.vmem %s4218_s7, %s3760_s26 }
  0x2c   : > { %800 = vmatprep.subr.bf16.mxu0 %v3496_v5  ;;  %vm786_vm1 = vcmask 523264   ;;  %v737_v15 = vshrl.u32 %v736_v14, 7  ;;  %s4250_s18 = sld [smem:[#allocation10_spill]]  ;;  %s3650_s15 = smov 64   ;;  %vm933_vm2 = vcmask 130048   ;;  %vm3652_vm3 = vmmov 0  }
  0x2d   : > { %s4251_s19 = sld [smem:[#allocation9_spill]]  ;;  %p3223_p5 = scmp.ne.s32.totalorder %s3754_s25, 5 }
  0x2e   : > { %v3836_v11 = vld [vmem:[#allocation2] sm:$0xff]  ;;  %v3843_v16 = vsub.s32 0, %v737_v15  ;;  %v3846_v18 = vsub.s32 1, %v737_v15  ;;  %v1233_v19 = vsub.s32 2, %v737_v15  ;;  %v1427_v21 = vsub.s32 3, %v737_v15  ;;  %s4255_s24 = sld [smem:[#allocation14_spill]] (!%p3223_p5) }
  0x2f   : > { %801 = vmatpush1.bf16.msra.mxu0 %v3498_v6  ;;  %v3838_v12 = vld [vmem:[#allocation2 + $0x8] sm:$0xff]  ;;  %v734_v17 = vld [vmem:[%s4249_s5] sm:$0x3]  ;;  %v1621_v22 = vsub.s32 4, %v737_v15  ;;  %v1815_v23 = vsub.s32 5, %v737_v15  ;;  %v2009_v24 = vsub.s32 6, %v737_v15  ;;  %s4252_s5 = scalar_lea.vmem %s4217_s6, %s3760_s26 }
  0x30   : > { %802 = vmatprep.subr.bf16.mxu0 %v3499_v7  ;;  %v725_v13 = vpack.c.bf16 %v3838_v12, %v3836_v11  ;;  %v739_v25 = vrot.slane %v734_v17, %v3843_v16  ;;  %v743_v26 = vrot.slane %v734_v17, %v3846_v18  ;;  %v2203_v36 = vsub.s32 7, %v737_v15 }
  0x32   : > { %v835_v20 = vld [vmem:[%s4250_s18] sm:$0xff] }
  0x33   : > { %803 = vmatpush1.bf16.msra.mxu0 %v3501_v8  ;;  %v961_v27 = vrot.slane %v835_v20, %v3846_v18  ;;  %v839_v28 = vrot.slane %v835_v20, %v3843_v16  ;;  %v1234_v29 = vrot.slane %v835_v20, %v1233_v19  ;;  %v1428_v31 = vrot.slane %v835_v20, %v1427_v21 }
  0x34   : > { %804 = vmatprep.subr.bf16.mxu0 %v3502_v9  ;;  %v1622_v32 = vrot.slane %v835_v20, %v1621_v22  ;;  %v1816_v33 = vrot.slane %v835_v20, %v1815_v23  ;;  %v2010_v34 = vrot.slane %v835_v20, %v2009_v24  ;;  %v2204_v50 = vrot.slane %v835_v20, %v2203_v36  ;;  %v3933_v22 = vld [vmem:[%s4251_s19] sm:$0xff]  ;;  %s4256_s17 = smov (!%p3223_p5), %s4255_s24 }
  0x37   : > { %805 = vmatpush1.bf16.msra.mxu0 %v3504_v10 }
  0x3a   : > { %3138 = vmatmul.mubr.msk.bf16.vlgmr.msra.gmra.mxu0 %vm786_vm1, %v725_v13 }
  0xfa   : > { %v824_v30 = vpop.f32.mrf.mxu0 }
  0xfb   : > { %v825_v35 = vadd.f32 %v824_v30, %v739_v25 }
  0xfc   : > { %v826_v37 = vpop.f32.mrf.mxu0 }
  0xfd   : > { %v827_v38 = vadd.f32 %v826_v37, %v743_v26  ;;  %v840_v39 = vmul.f32 %v839_v28, %v825_v35  ;;  %v962_v40 = vmul.f32 %v961_v27, %v825_v35  ;;  %v3855_v41 = vmul.f32 %v1234_v29, %v825_v35 }
  0xfe   : > { %v828_v42 = vpop.f32.mrf.mxu0  ;;  %v3857_v43 = vmul.f32 %v1428_v31, %v825_v35  ;;  %v3859_v44 = vmul.f32 %v1622_v32, %v825_v35  ;;  %v3861_v45 = vmul.f32 %v1816_v33, %v825_v35  ;;  %v3863_v46 = vmul.f32 %v2010_v34, %v825_v35 }
  0xff   : > { %v829_v47 = vadd.f32 %v828_v42, %v739_v25  ;;  %3338 = vmatprep.mubr.msk.f32.mxu1 %vm786_vm1, %v840_v39  ;;  %v1067_v48 = vmul.f32 %v961_v27, %v827_v38  ;;  %v3866_v49 = vmul.f32 %v1428_v31, %v827_v38  ;;  %v3868_v52 = vmul.f32 %v1234_v29, %v827_v38  ;;  %v3939_v25 = vld [vmem:[%s4251_s19 + $0x8] sm:$0xff] }
 0x100   : > { %v830_v51 = vpop.f32.mrf.mxu0  ;;  %v3870_v53 = vmul.f32 %v1622_v32, %v827_v38  ;;  %v3872_v54 = vmul.f32 %v1816_v33, %v827_v38  ;;  %v3874_v55 = vmul.f32 %v2010_v34, %v827_v38  ;;  %v956_v1 = vmul.f32 %v839_v28, %v827_v38 }
 0x101   : > { %v831_v56 = vadd.f32 %v830_v51, %v743_v26  ;;  %846 = vrot.lane.b32.xlu0 %v829_v47, %s3650_s15  ;;  %v841_v57 = vmul.f32 %v839_v28, %v829_v47  ;;  %v963_v58 = vmul.f32 %v961_v27, %v829_v47  ;;  %v3876_v59 = vmul.f32 %v1234_v29, %v829_v47 }
 0x102   : > { %v3878_v60 = vmul.f32 %v1428_v31, %v829_v47  ;;  %v3880_v61 = vmul.f32 %v1622_v32, %v829_v47  ;;  %v3882_v62 = vmul.f32 %v1816_v33, %v829_v47  ;;  %v3884_v63 = vmul.f32 %v2010_v34, %v829_v47 }
 0x103   : > { %v957_v0 = vmul.f32 %v839_v28, %v831_v56  ;;  %v1068_v2 = vmul.f32 %v961_v27, %v831_v56  ;;  %v3886_v3 = vmul.f32 %v1428_v31, %v831_v56  ;;  %v3888_v5 = vmul.f32 %v1622_v32, %v831_v56 }
 0x104   : > { %v3890_v6 = vmul.f32 %v1816_v33, %v831_v56  ;;  %v3892_v7 = vmul.f32 %v2010_v34, %v831_v56  ;;  %v3894_v8 = vmul.f32 %v2204_v50, %v831_v56  ;;  %v3896_v9 = vmul.f32 %v2204_v50, %v827_v38 }
 0x105   : > { %3355 = vmatprep.subr.mxu0 %v957_v0  ;;  %844 = vrot.lane.b32.xlu0 %v825_v35, %s3650_s15  ;;  %v3898_v10 = vmul.f32 %v2204_v50, %v825_v35  ;;  %v3900_v13 = vmul.f32 %v2204_v50, %v829_v47  ;;  %v3902_v14 = vmul.f32 %v1234_v29, %v831_v56  ;;  %s4254_s15 = scalar_lea.vmem %s4219_s8, %s3760_s26 }
 0x106   : > { %3356 = vmatpush3.msra.mxu0 %v957_v0 }
 0x107   : > { %3357 = vmatprep.subr.mxu0 %v956_v1 }
 0x108   : > { %3358 = vmatpush3.msra.mxu0 %v956_v1 }
 0x109   : > { %3369 = vmatprep.subr.mxu0 %v3902_v14 }
 0x173   : > { %v3905_v15 = vpop.permute.xlu0 %846 }
 0x174   : > { %3334 = vmatprep.subr.msk.mxu1 %vm786_vm1, %v3905_v15 }
 0x175   : > { %3335 = vmatpush3.xpose.msk.msra.mxu1 %vm786_vm1, %v3905_v15 }
 0x177   : > { %v3911_v17 = vpop.permute.xlu0 %844 }
 0x178   : > { %3336 = vmatprep.subr.msk.mxu1 %vm786_vm1, %v3911_v17 }
 0x179   : > { %3337 = vmatpush3.xpose.msk.msra.mxu1 %vm786_vm1, %v3911_v17 }
 0x17a   : > { %3341 = vmatprep.subr.msk.mxu1 %vm786_vm1, %v3905_v15 }
 0x17c   : > { %3339 = vmatmul.mubr.msk.f32.vlgmr.msra.gmra.mxu1 %vm786_vm1, %v841_v57 }
 0x17d   : > { %3342 = vmatpush3.xpose.msk.msra.mxu1 %vm786_vm1, %v3905_v15  ;;  %3345 = vmatprep.mubr.msk.f32.mxu1 %vm786_vm1, %v962_v40 }
 0x17e   : > { %3343 = vmatprep.subr.msk.mxu1 %vm786_vm1, %v3911_v17 }
 0x181   : > { %3344 = vmatpush3.xpose.msk.msra.mxu1 %vm786_vm1, %v3911_v17 }
 0x182   : > { %3348 = vmatprep.subr.mxu1 %v1068_v2 }
 0x184   : > { %3346 = vmatmul.mubr.msk.f32.vlgmr.msra.gmra.mxu1 %vm786_vm1, %v963_v58 }
 0x185   : > { %3349 = vmatpush3.msra.mxu1 %v1068_v2 }
 0x186   : > { %3350 = vmatprep.subr.mxu1 %v1067_v48 }
 0x187   : > { %3351 = vmatpush3.msra.mxu1 %v1067_v48 }
 0x188   : > { %3362 = vmatprep.subr.msk.mxu1 %vm786_vm1, %v3905_v15 }
 0x23c   : > { %v3340_v19 = vpop.f32.mrf.mxu1 }
 0x23d   : > { %v930_v40 = vadd.f32 %v3340_v19, %v3939_v25 }
 0x23e   : > { %v924_v20 = vpop.f32.mrf.mxu1 }
 0x23f   : > { %v925_v38 = vadd.f32 %v924_v20, %v3933_v22  ;;  %v937_v47 = vsel %vm933_vm2, %v930_v40, -inf }
 0x241   : > { %v934_v42 = vsel %vm933_vm2, %v925_v38, -inf }
 0x244   : > { %v3347_v21 = vpop.f32.mrf.mxu1 }
 0x245   : > { %v1042_v26 = vadd.f32 %v3347_v21, %v3939_v25 }
 0x246   : > { %v1036_v23 = vpop.f32.mrf.mxu1 }
 0x247   : > { %v1037_v24 = vadd.f32 %v1036_v23, %v3933_v22  ;;  %v1048_v28 = vsel %vm933_vm2, %v1042_v26, -inf }
 0x249   : > { %v1045_v27 = vsel %vm933_vm2, %v1037_v24, -inf }
 0x24a   : > { %1046 = vmax.xlane.f32.xlu1 %v1045_v27 }
 0x24e   : > { %1049 = vmax.xlane.f32.xlu1 %v1048_v28 }
 0x2d3   : > { %v1047_v29 = vpop.xlane.xlu1 %1046 }
 0x2d4   : > { %v1051_v30 = vsub.f32 %v1037_v24, %v1047_v29 }
 0x2d6   : > { %v1053_v31 = vmul.f32 1.442695, %v1051_v30 }
 0x2d7   : > { %v1050_v32 = vpop.xlane.xlu1 %1049 }
 0x2d8   : > { %3537 = vpow2.f32 %v1053_v31  ;;  %v1052_v33 = vsub.f32 %v1042_v26, %v1050_v32 }
 0x2da   : > { %v1055_v34 = vmul.f32 1.442695, %v1052_v33 }
 0x2dc   : > { %3539 = vpow2.f32 %v1055_v34 }
 0x2e5   : > { %v3538_v35 = vpop.eup %3537 }
 0x2e6   : > { %v1057_v36 = vsel %vm933_vm2, %v3538_v35, 0.0 }
 0x2e7   : > { %1058 = vadd.xlane.f32.xlu0 %v1057_v36 }
 0x2e9   : > { %v3540_v37 = vpop.eup %3539 }
 0x2ea   : > { %v1060_v39 = vsel %vm933_vm2, %v3540_v37, 0.0 }
 0x2eb   : > { %1061 = vadd.xlane.f32.xlu1 %v1060_v39 }
 0x2ef   : > { %935 = vmax.xlane.f32.xlu1 %v934_v42 }
 0x2f3   : > { %938 = vmax.xlane.f32.xlu1 %v937_v47 }
 0x370   : > { %v1059_v48 = vpop.xlane.xlu0 %1058 }
 0x371   : > { %3541 = vrcp.f32 %v1059_v48 }
 0x374   : > { %v1062_v50 = vpop.xlane.xlu1 %1061 }
 0x375   : > { %3543 = vrcp.f32 %v1062_v50 }
 0x37e   : > { %v3542_v51 = vpop.eup %3541 }
 0x37f   : > { %v1065_v56 = vmul.f32 %v3542_v51, %v3538_v35 }
 0x381   : > { %3352 = vmatprep.mubr.msk.f32.mxu1 %vm933_vm2, %v1065_v56 }
 0x382   : > { %v3544_v57 = vpop.eup %3543 }
 0x383   : > { %v1066_v58 = vmul.f32 %v3544_v57, %v3540_v37 }
 0x385   : > { %3353 = vmatmul.mubr.msk.f32.vlgmr.msra.gmra.mxu1 %vm933_vm2, %v1066_v58 }
 0x386   : > { %3363 = vmatpush3.xpose.msk.msra.mxu1 %vm786_vm1, %v3905_v15  ;;  %3366 = vmatprep.mubr.msk.f32.mxu1 %vm786_vm1, %v3855_v41  ;;  %v936_v41 = vpop.xlane.xlu1 %935 }
 0x387   : > { %3364 = vmatprep.subr.msk.mxu1 %vm786_vm1, %v3911_v17  ;;  %v940_v0 = vsub.f32 %v925_v38, %v936_v41 }
 0x389   : > { %v942_v2 = vmul.f32 1.442695, %v940_v0 }
 0x38a   : > { %3365 = vmatpush3.xpose.msk.msra.mxu1 %vm786_vm1, %v3911_v17  ;;  %v939_v1 = vpop.xlane.xlu1 %938 }
 0x38b   : > { %3383 = vmatprep.subr.mxu1 %v3886_v3  ;;  %v941_v19 = vsub.f32 %v930_v40, %v939_v1  ;;  %3545 = vpow2.f32 %v942_v2 }
 0x38d   : > { %3367 = vmatmul.mubr.msk.f32.vlgmr.msra.gmra.mxu1 %vm786_vm1, %v3876_v59  ;;  %v944_v21 = vmul.f32 1.442695, %v941_v19 }
 0x38e   : > { %3384 = vmatpush3.msra.mxu1 %v3886_v3 }
 0x38f   : > { %3385 = vmatprep.subr.mxu1 %v3866_v49  ;;  %3547 = vpow2.f32 %v944_v21 }
 0x390   : > { %3386 = vmatpush3.msra.mxu1 %v3866_v49 }
 0x391   : > { %3390 = vmatprep.subr.msk.mxu1 %vm786_vm1, %v3905_v15 }
 0x398   : > { %v3546_v28 = vpop.eup %3545 }
 0x399   : > { %v946_v29 = vsel %vm933_vm2, %v3546_v28, 0.0 }
 0x39c   : > { %v3548_v30 = vpop.eup %3547 }
 0x39d   : > { %v949_v31 = vsel %vm933_vm2, %v3548_v30, 0.0 }
 0x445   : > { %v3968_v20 = vpop.f32.mrf.mxu1 }
 0x447   : > { %v3970_v23 = vpop.f32.mrf.mxu1 }
 0x44d   : > { %v3368_v59 = vpop.f32.mrf.mxu1 }
 0x44e   : > { %v1315_v49 = vadd.f32 %v3368_v59, %v3939_v25 }
 0x44f   : > { %v1309_v3 = vpop.f32.mrf.mxu1 }
 0x450   : > { %v1310_v24 = vadd.f32 %v1309_v3, %v3933_v22  ;;  %v1321_v27 = vsel %vm933_vm2, %v1315_v49, -inf }
 0x452   : > { %v1318_v26 = vsel %vm933_vm2, %v1310_v24, -inf }
 0x453   : > { %1319 = vmax.xlane.f32.xlu1 %v1318_v26 }
 0x457   : > { %1322 = vmax.xlane.f32.xlu1 %v1321_v27 }
 0x45b   : > { %947 = vadd.xlane.f32.xlu1 %v946_v29 }
 0x45f   : > { %950 = vadd.xlane.f32.xlu1 %v949_v31 }
 0x4dc   : > { %v1320_v32 = vpop.xlane.xlu1 %1319 }
 0x4dd   : > { %v1324_v33 = vsub.f32 %v1310_v24, %v1320_v32 }
 0x4df   : > { %v1326_v34 = vmul.f32 1.442695, %v1324_v33 }
 0x4e0   : > { %v1323_v35 = vpop.xlane.xlu1 %1322 }
 0x4e1   : > { %3549 = vpow2.f32 %v1326_v34  ;;  %v1325_v36 = vsub.f32 %v1315_v49, %v1323_v35 }
 0x4e3   : > { %v1328_v37 = vmul.f32 1.442695, %v1325_v36 }
 0x4e4   : > { %v948_v38 = vpop.xlane.xlu1 %947 }
 0x4e5   : > { %3551 = vpow2.f32 %v1328_v37 }
 0x4e6   : > { %3553 = vrcp.f32 %v948_v38 }
 0x4e8   : > { %v951_v39 = vpop.xlane.xlu1 %950 }
 0x4e9   : > { %3555 = vrcp.f32 %v951_v39 }
 0x4ee   : > { %v3550_v40 = vpop.eup %3549 }
 0x4ef   : > { %v1330_v42 = vsel %vm933_vm2, %v3550_v40, 0.0 }
 0x4f0   : > { %1331 = vadd.xlane.f32.xlu1 %v1330_v42 }
 0x4f2   : > { %v3552_v47 = vpop.eup %3551 }
 0x4f3   : > { %v3554_v48 = vpop.eup %3553  ;;  %v1333_v50 = vsel %vm933_vm2, %v3552_v47, 0.0 }
 0x4f4   : > { %1334 = vadd.xlane.f32.xlu0 %v1333_v50  ;;  %v954_v51 = vmul.f32 %v3554_v48, %v3546_v28 }
 0x4f6   : > { %v3556_v56 = vpop.eup %3555  ;;  %3359 = vmatprep.mubr.msk.f32.mxu0 %vm933_vm2, %v954_v51 }
 0x4f7   : > { %v955_v57 = vmul.f32 %v3556_v56, %v3548_v30 }
 0x4f9   : > { %3360 = vmatmul.mubr.msk.f32.vlgmr.msra.gmra.mxu0 %vm933_vm2, %v955_v57 }
 0x4fa   : > { %3370 = vmatpush3.msra.mxu0 %v3902_v14 }
 0x4fb   : > { %3371 = vmatprep.subr.mxu0 %v3868_v52 }
 0x4fc   : > { %3372 = vmatpush3.msra.mxu0 %v3868_v52 }
 0x4fd   : > { %3376 = vmatprep.subr.msk.mxu0 %vm786_vm1, %v3905_v15 }
 0x579   : > { %v1332_v58 = vpop.xlane.xlu1 %1331 }
 0x57a   : > { %3557 = vrcp.f32 %v1332_v58 }
 0x57d   : > { %v1335_v41 = vpop.xlane.xlu0 %1334 }
 0x57e   : > { %3559 = vrcp.f32 %v1335_v41 }
 0x587   : > { %v3558_v0 = vpop.eup %3557 }
 0x588   : > { %v1338_v1 = vmul.f32 %v3558_v0, %v3550_v40 }
 0x58a   : > { %3373 = vmatprep.mubr.msk.f32.mxu0 %vm933_vm2, %v1338_v1 }
 0x58b   : > { %v3560_v2 = vpop.eup %3559 }
 0x58c   : > { %v1339_v19 = vmul.f32 %v3560_v2, %v3552_v47 }
 0x58e   : > { %3374 = vmatmul.mubr.msk.f32.vlgmr.msra.gmra.mxu0 %vm933_vm2, %v1339_v19 }
 0x58f   : > { %3377 = vmatpush3.xpose.msk.msra.mxu0 %vm786_vm1, %v3905_v15  ;;  %3380 = vmatprep.mubr.msk.f32.mxu0 %vm786_vm1, %v3857_v43 }
 0x590   : > { %3378 = vmatprep.subr.msk.mxu0 %vm786_vm1, %v3911_v17 }
 0x593   : > { %3379 = vmatpush3.xpose.msk.msra.mxu0 %vm786_vm1, %v3911_v17 }
 0x594   : > { %3397 = vmatprep.subr.mxu0 %v3888_v5 }
 0x596   : > { %3381 = vmatmul.mubr.msk.f32.vlgmr.msra.gmra.mxu0 %vm786_vm1, %v3878_v60 }
 0x597   : > { %3398 = vmatpush3.msra.mxu0 %v3888_v5 }
 0x598   : > { %3399 = vmatprep.subr.mxu0 %v3870_v53 }
 0x599   : > { %3400 = vmatpush3.msra.mxu0 %v3870_v53 }
 0x59a   : > { %3404 = vmatprep.subr.msk.mxu0 %vm786_vm1, %v3905_v15 }
 0x5b9   : > { %v3361_v43 = vpop.f32.mrf.mxu0 }
 0x5ba   : > { %v1228_v14 = vadd.f32 %v3361_v43, %v3968_v20 }
 0x5bb   : > { %v1222_v52 = vpop.f32.mrf.mxu0 }
 0x64e   : > { %v3375_v21 = vpop.f32.mrf.mxu0 }
 0x64f   : > { %v1424_v59 = vadd.f32 %v3375_v21, %v1228_v14 }
 0x650   : > { %v1414_v3 = vpop.f32.mrf.mxu0 }
 0x656   : > { %v3382_v24 = vpop.f32.mrf.mxu0 }
 0x657   : > { %v1509_v49 = vadd.f32 %v3382_v24, %v3939_v25 }
 0x658   : > { %v1503_v60 = vpop.f32.mrf.mxu0 }
 0x659   : > { %v1504_v5 = vadd.f32 %v1503_v60, %v3933_v22  ;;  %v1515_v26 = vsel %vm933_vm2, %v1509_v49, -inf }
 0x65a   : > { %1516 = vmax.xlane.f32.xlu0 %v1515_v26 }
 0x65b   : > { %v1512_v53 = vsel %vm933_vm2, %v1504_v5, -inf }
 0x65c   : > { %1513 = vmax.xlane.f32.xlu1 %v1512_v53 }
 0x6e3   : > { %v1517_v27 = vpop.xlane.xlu0 %1516 }
 0x6e4   : > { %v1519_v28 = vsub.f32 %v1509_v49, %v1517_v27 }
 0x6e5   : > { %v1514_v29 = vpop.xlane.xlu1 %1513 }
 0x6e6   : > { %v1522_v30 = vmul.f32 1.442695, %v1519_v28  ;;  %v1518_v20 = vsub.f32 %v1504_v5, %v1514_v29 }
 0x6e8   : > { %3561 = vpow2.f32 %v1522_v30  ;;  %v1520_v31 = vmul.f32 1.442695, %v1518_v20 }
 0x6ea   : > { %3563 = vpow2.f32 %v1520_v31 }
 0x6f5   : > { %v3562_v32 = vpop.eup %3561 }
 0x6f6   : > { %v1527_v33 = vsel %vm933_vm2, %v3562_v32, 0.0 }
 0x6f7   : > { %v3564_v34 = vpop.eup %3563  ;;  %1528 = vadd.xlane.f32.xlu0 %v1527_v33 }
 0x6f8   : > { %v1524_v35 = vsel %vm933_vm2, %v3564_v34, 0.0 }
 0x6f9   : > { %1525 = vadd.xlane.f32.xlu1 %v1524_v35 }
 0x780   : > { %v1529_v36 = vpop.xlane.xlu0 %1528 }
 0x781   : > { %3565 = vrcp.f32 %v1529_v36 }
 0x782   : > { %v1526_v37 = vpop.xlane.xlu1 %1525 }
 0x783   : > { %3567 = vrcp.f32 %v1526_v37 }
 0x78e   : > { %v3566_v38 = vpop.eup %3565 }
 0x78f   : > { %v1533_v42 = vmul.f32 %v3566_v38, %v3562_v32 }
 0x790   : > { %v3568_v39 = vpop.eup %3567 }
 0x791   : > { %v1532_v40 = vmul.f32 %v3568_v39, %v3564_v34 }
 0x793   : > { %3387 = vmatprep.mubr.msk.f32.mxu1 %vm933_vm2, %v1532_v40 }
 0x794   : > { %3388 = vmatmul.mubr.msk.f32.vlgmr.msra.gmra.mxu1 %vm933_vm2, %v1533_v42 }
 0x795   : > { %3391 = vmatpush3.xpose.msk.msra.mxu1 %vm786_vm1, %v3905_v15  ;;  %3394 = vmatprep.mubr.msk.f32.mxu1 %vm786_vm1, %v3859_v44  ;;  %v1223_v44 = vadd.f32 %v1222_v52, %v3970_v23 }
 0x796   : > { %3392 = vmatprep.subr.msk.mxu1 %vm786_vm1, %v3911_v17 }
 0x797   : > { %v1423_v48 = vadd.f32 %v1414_v3, %v1223_v44 }
 0x799   : > { %3393 = vmatpush3.xpose.msk.msra.mxu1 %vm786_vm1, %v3911_v17 }
 0x79a   : > { %3411 = vmatprep.subr.mxu1 %v3890_v6 }
 0x79c   : > { %3395 = vmatmul.mubr.msk.f32.vlgmr.msra.gmra.mxu1 %vm786_vm1, %v3880_v61 }
 0x79d   : > { %3412 = vmatpush3.msra.mxu1 %v3890_v6 }
 0x79e   : > { %3413 = vmatprep.subr.mxu1 %v3872_v54 }
 0x79f   : > { %3414 = vmatpush3.msra.mxu1 %v3872_v54 }
 0x7a0   : > { %3418 = vmatprep.subr.msk.mxu1 %vm786_vm1, %v3905_v15 }
 0x854   : > { %v3389_v47 = vpop.f32.mrf.mxu1 }
 0x855   : > { %v1618_v50 = vadd.f32 %v3389_v47, %v1424_v59 }
 0x856   : > { %v1608_v51 = vpop.f32.mrf.mxu1 }
 0x857   : > { %v1617_v56 = vadd.f32 %v1608_v51, %v1423_v48 }
 0x85c   : > { %v3396_v57 = vpop.f32.mrf.mxu1 }
 0x85d   : > { %v1703_v58 = vadd.f32 %v3396_v57, %v3939_v25 }
 0x85e   : > { %v1697_v61 = vpop.f32.mrf.mxu1 }
 0x85f   : > { %v1698_v6 = vadd.f32 %v1697_v61, %v3933_v22  ;;  %v1709_v41 = vsel %vm933_vm2, %v1703_v58, -inf }
 0x860   : > { %1710 = vmax.xlane.f32.xlu0 %v1709_v41 }
 0x861   : > { %v1706_v54 = vsel %vm933_vm2, %v1698_v6, -inf }
 0x862   : > { %1707 = vmax.xlane.f32.xlu1 %v1706_v54 }
 0x8e9   : > { %v1711_v0 = vpop.xlane.xlu0 %1710 }
 0x8ea   : > { %v1713_v1 = vsub.f32 %v1703_v58, %v1711_v0 }
 0x8eb   : > { %v1708_v23 = vpop.xlane.xlu1 %1707 }
 0x8ec   : > { %v1716_v2 = vmul.f32 1.442695, %v1713_v1  ;;  %v1712_v19 = vsub.f32 %v1698_v6, %v1708_v23 }
 0x8ee   : > { %3569 = vpow2.f32 %v1716_v2  ;;  %v1714_v43 = vmul.f32 1.442695, %v1712_v19 }
 0x8f0   : > { %3571 = vpow2.f32 %v1714_v43 }
 0x8fb   : > { %v3570_v52 = vpop.eup %3569 }
 0x8fc   : > { %v1721_v14 = vsel %vm933_vm2, %v3570_v52, 0.0 }
 0x8fd   : > { %v3572_v21 = vpop.eup %3571  ;;  %1722 = vadd.xlane.f32.xlu0 %v1721_v14 }
 0x8fe   : > { %v1718_v59 = vsel %vm933_vm2, %v3572_v21, 0.0 }
 0x8ff   : > { %1719 = vadd.xlane.f32.xlu1 %v1718_v59 }
 0x986   : > { %v1723_v3 = vpop.xlane.xlu0 %1722 }
 0x987   : > { %3573 = vrcp.f32 %v1723_v3 }
 0x988   : > { %v1720_v24 = vpop.xlane.xlu1 %1719 }
 0x989   : > { %3575 = vrcp.f32 %v1720_v24 }
 0x994   : > { %v3574_v49 = vpop.eup %3573 }
 0x995   : > { %v1727_v26 = vmul.f32 %v3574_v49, %v3570_v52 }
 0x996   : > { %v3576_v60 = vpop.eup %3575 }
 0x997   : > { %v1726_v5 = vmul.f32 %v3576_v60, %v3572_v21 }
 0x999   : > { %3401 = vmatprep.mubr.msk.f32.mxu0 %vm933_vm2, %v1726_v5 }
 0x99a   : > { %3402 = vmatmul.mubr.msk.f32.vlgmr.msra.gmra.mxu0 %vm933_vm2, %v1727_v26 }
 0x99b   : > { %3405 = vmatpush3.xpose.msk.msra.mxu0 %vm786_vm1, %v3905_v15  ;;  %3408 = vmatprep.mubr.msk.f32.mxu0 %vm786_vm1, %v3861_v45 }
 0x99c   : > { %3406 = vmatprep.subr.msk.mxu0 %vm786_vm1, %v3911_v17 }
 0x99f   : > { %3407 = vmatpush3.xpose.msk.msra.mxu0 %vm786_vm1, %v3911_v17 }
 0x9a0   : > { %3425 = vmatprep.subr.mxu0 %v3892_v7 }
 0x9a2   : > { %3409 = vmatmul.mubr.msk.f32.vlgmr.msra.gmra.mxu0 %vm786_vm1, %v3882_v62 }
 0x9a3   : > { %3426 = vmatpush3.msra.mxu0 %v3892_v7 }
 0x9a4   : > { %3427 = vmatprep.subr.mxu0 %v3874_v55 }
 0x9a5   : > { %3428 = vmatpush3.msra.mxu0 %v3874_v55 }
 0x9a6   : > { %3432 = vmatprep.subr.msk.mxu0 %vm786_vm1, %v3905_v15 }
 0xa5a   : > { %v3403_v45 = vpop.f32.mrf.mxu0 }
 0xa5b   : > { %v1812_v53 = vadd.f32 %v3403_v45, %v1618_v50 }
 0xa5c   : > { %v1802_v27 = vpop.f32.mrf.mxu0 }
 0xa5d   : > { %v1811_v28 = vadd.f32 %v1802_v27, %v1617_v56 }
 0xa62   : > { %v3410_v29 = vpop.f32.mrf.mxu0 }
 0xa63   : > { %v1897_v30 = vadd.f32 %v3410_v29, %v3939_v25 }
 0xa64   : > { %v1891_v20 = vpop.f32.mrf.mxu0 }
 0xa65   : > { %v1892_v31 = vadd.f32 %v1891_v20, %v3933_v22  ;;  %v1903_v62 = vsel %vm933_vm2, %v1897_v30, -inf }
 0xa66   : > { %1904 = vmax.xlane.f32.xlu0 %v1903_v62 }
 0xa67   : > { %v1900_v7 = vsel %vm933_vm2, %v1892_v31, -inf }
 0xa68   : > { %1901 = vmax.xlane.f32.xlu1 %v1900_v7 }
 0xaef   : > { %v1905_v55 = vpop.xlane.xlu0 %1904 }
 0xaf0   : > { %v1907_v32 = vsub.f32 %v1897_v30, %v1905_v55 }
 0xaf1   : > { %v1902_v33 = vpop.xlane.xlu1 %1901 }
 0xaf2   : > { %v1910_v34 = vmul.f32 1.442695, %v1907_v32  ;;  %v1906_v35 = vsub.f32 %v1892_v31, %v1902_v33 }
 0xaf4   : > { %3577 = vpow2.f32 %v1910_v34  ;;  %v1908_v36 = vmul.f32 1.442695, %v1906_v35  ;;  %v3505_v34 = vld [vmem:[%s3782_s16 + $0x18] sm:$0xff]   ;;  %v3651_v35 = vmov 0.0  }
 0xaf6   : > { %3579 = vpow2.f32 %v1908_v36  ;;  %v3506_v36 = vld [vmem:[%s3782_s16 + $0x10] sm:$0xff]  }
 0xb01   : > { %v3578_v37 = vpop.eup %3577 }
 0xb02   : > { %v1915_v38 = vsel %vm933_vm2, %v3578_v37, 0.0 }
 0xb03   : > { %v3580_v39 = vpop.eup %3579  ;;  %1916 = vadd.xlane.f32.xlu0 %v1915_v38 }
 0xb04   : > { %v1912_v40 = vsel %vm933_vm2, %v3580_v39, 0.0 }
 0xb05   : > { %1913 = vadd.xlane.f32.xlu1 %v1912_v40 }
 0xb8c   : > { %v1917_v42 = vpop.xlane.xlu0 %1916 }
 0xb8d   : > { %3581 = vrcp.f32 %v1917_v42 }
 0xb8e   : > { %v1914_v44 = vpop.xlane.xlu1 %1913 }
 0xb8f   : > { %3583 = vrcp.f32 %v1914_v44 }
 0xb9a   : > { %v3582_v47 = vpop.eup %3581 }
 0xb9b   : > { %v1921_v51 = vmul.f32 %v3582_v47, %v3578_v37  ;;  %v3507_v47 = vld [vmem:[%s3782_s16 + $0x8] sm:$0xff]  }
 0xb9c   : > { %v3584_v48 = vpop.eup %3583 }
 0xb9d   : > { %v1920_v50 = vmul.f32 %v3584_v48, %v3580_v39  ;;  %v3508_v48 = vld [vmem:[%s3782_s16] sm:$0xff]  }
 0xb9f   : > { %3415 = vmatprep.mubr.msk.f32.mxu1 %vm933_vm2, %v1920_v50 }
 0xba0   : > { %3416 = vmatmul.mubr.msk.f32.vlgmr.msra.gmra.mxu1 %vm933_vm2, %v1921_v51 }
 0xba1   : > { %3419 = vmatpush3.xpose.msk.msra.mxu1 %vm786_vm1, %v3905_v15  ;;  %3422 = vmatprep.mubr.msk.f32.mxu1 %vm786_vm1, %v3863_v46 }
 0xba2   : > { %3420 = vmatprep.subr.msk.mxu1 %vm786_vm1, %v3911_v17 }
 0xba5   : > { %3421 = vmatpush3.xpose.msk.msra.mxu1 %vm786_vm1, %v3911_v17 }
 0xba6   : > { %3439 = vmatprep.subr.mxu1 %v3894_v8 }
 0xba8   : > { %3423 = vmatmul.mubr.msk.f32.vlgmr.msra.gmra.mxu1 %vm786_vm1, %v3884_v63 }
 0xba9   : > { %3440 = vmatpush3.msra.mxu1 %v3894_v8 }
 0xbaa   : > { %3441 = vmatprep.subr.mxu1 %v3896_v9 }
 0xbab   : > { %3442 = vmatpush3.msra.mxu1 %v3896_v9 }
 0xc60   : > { %v3417_v56 = vpop.f32.mrf.mxu1 }
 0xc61   : > { %v2006_v57 = vadd.f32 %v3417_v56, %v1812_v53 }
 0xc62   : > { %v1996_v46 = vpop.f32.mrf.mxu1 }
 0xc63   : > { %v2005_v58 = vadd.f32 %v1996_v46, %v1811_v28 }
 0xc68   : > { %v3424_v61 = vpop.f32.mrf.mxu1 }
 0xc69   : > { %v2091_v6 = vadd.f32 %v3424_v61, %v3939_v25 }
 0xc6a   : > { %v2085_v41 = vpop.f32.mrf.mxu1 }
 0xc6b   : > { %v2086_v54 = vadd.f32 %v2085_v41, %v3933_v22  ;;  %v2097_v0 = vsel %vm933_vm2, %v2091_v6, -inf }
 0xc6c   : > { %2098 = vmax.xlane.f32.xlu0 %v2097_v0 }
 0xc6d   : > { %v2094_v63 = vsel %vm933_vm2, %v2086_v54, -inf }
 0xc6e   : > { %2095 = vmax.xlane.f32.xlu1 %v2094_v63 }
 0xcf5   : > { %v2099_v8 = vpop.xlane.xlu0 %2098 }
 0xcf6   : > { %v2101_v1 = vsub.f32 %v2091_v6, %v2099_v8 }
 0xcf7   : > { %v2096_v23 = vpop.xlane.xlu1 %2095 }
 0xcf8   : > { %v2104_v9 = vmul.f32 1.442695, %v2101_v1  ;;  %v2100_v2 = vsub.f32 %v2086_v54, %v2096_v23 }
 0xcfa   : > { %3585 = vpow2.f32 %v2104_v9  ;;  %v2102_v19 = vmul.f32 1.442695, %v2100_v2 }
 0xcfc   : > { %3587 = vpow2.f32 %v2102_v19 }
 0xd07   : > { %v3586_v43 = vpop.eup %3585 }
 0xd08   : > { %v2109_v52 = vsel %vm933_vm2, %v3586_v43, 0.0 }
 0xd09   : > { %v3588_v14 = vpop.eup %3587  ;;  %2110 = vadd.xlane.f32.xlu0 %v2109_v52 }
 0xd0a   : > { %v2106_v21 = vsel %vm933_vm2, %v3588_v14, 0.0 }
 0xd0b   : > { %2107 = vadd.xlane.f32.xlu1 %v2106_v21 }
 0xd92   : > { %v2111_v59 = vpop.xlane.xlu0 %2110 }
 0xd93   : > { %3589 = vrcp.f32 %v2111_v59 }
 0xd94   : > { %v2108_v3 = vpop.xlane.xlu1 %2107 }
 0xd95   : > { %3591 = vrcp.f32 %v2108_v3  ;;  %v3511_v3 = vld [vmem:[%s3795_s1 + $0x34] ss:$8 sps:$4 sm:$0xff]  }
 0xda0   : > { %v3590_v24 = vpop.eup %3589 }
 0xda1   : > { %v2115_v5 = vmul.f32 %v3590_v24, %v3586_v43  ;;  %v3509_v24 = vld [vmem:[%s3795_s1 + $0x30] ss:$8 sps:$4 sm:$0xff]  }
 0xda2   : > { %v3592_v49 = vpop.eup %3591 }
 0xda3   : > { %v2114_v60 = vmul.f32 %v3592_v49, %v3588_v14  ;;  %v3514_v49 = vld [vmem:[%s3795_s1 + $0x24] ss:$8 sps:$4 sm:$0xff]  }
 0xda5   : > { %3429 = vmatprep.mubr.msk.f32.mxu0 %vm933_vm2, %v2114_v60  ;;  %v3512_v60 = vld [vmem:[%s3795_s1 + $0x20] ss:$8 sps:$4 sm:$0xff]  }
 0xda6   : > { %3430 = vmatmul.mubr.msk.f32.vlgmr.msra.gmra.mxu0 %vm933_vm2, %v2115_v5  ;;  %v3515_v5 = vld [vmem:[%s3795_s1 + $0x10] ss:$8 sps:$4 sm:$0xff]  }
 0xda7   : > { %3433 = vmatpush3.xpose.msk.msra.mxu0 %vm786_vm1, %v3905_v15  ;;  %3436 = vmatprep.mubr.msk.f32.mxu0 %vm786_vm1, %v3898_v10 }
 0xda8   : > { %3434 = vmatprep.subr.msk.mxu0 %vm786_vm1, %v3911_v17 }
 0xdab   : > { %3435 = vmatpush3.xpose.msk.msra.mxu0 %vm786_vm1, %v3911_v17 }
 0xdac   : > { %3446 = vmatprep.subr.bf16.mxu0 %v3651_v35 }
 0xdae   : > { %3437 = vmatmul.mubr.msk.f32.vlgmr.msra.gmra.mxu0 %vm786_vm1, %v3900_v13 }
 0xdaf   : > { %3447 = vmatpush3.bf16.msra.mxu0 %v3505_v34  ;;  %3454 = vmatprep.mubr.msk.bf16.mxu0 %vm3652_vm3, %v3651_v35 }
 0xdb0   : > { %3448 = vmatprep.subr.bf16.mxu0 %v3651_v35 }
 0xdb3   : > { %3449 = vmatpush3.bf16.msra.mxu0 %v3506_v36 }
 0xdb4   : > { %3450 = vmatprep.subr.bf16.mxu0 %v3651_v35 }
 0xdb7   : > { %3451 = vmatpush3.bf16.msra.mxu0 %v3507_v47 }
 0xdb8   : > { %3452 = vmatprep.subr.bf16.mxu0 %v3651_v35  ;;  %v3193_v35 = vld [vmem:[%s4253_s30] ss:$0 sm:$0xff] }
 0xdbb   : > { %3453 = vmatpush3.bf16.msra.mxu0 %v3508_v48  ;;  %v3531_v48 = vld [vmem:[%s3806_s2 + $0x50] sm:$0xff]  }
 0xdbc   : > { %2598 = vmatprep.subr.bf16.mxu0 %v3511_v3 }
 0xe66   : > { %v3431_v26 = vpop.f32.mrf.mxu0 }
 0xe67   : > { %v2200_v45 = vadd.f32 %v3431_v26, %v2006_v57  ;;  %v3517_v26 = vld [vmem:[%s3795_s1 + $0x14] ss:$8 sps:$4 sm:$0xff]  }
 0xe68   : > { %v2190_v53 = vpop.f32.mrf.mxu0 }
 0xe69   : > { %v2199_v27 = vadd.f32 %v2190_v53, %v2005_v58  ;;  %v3187_v58 = vld [vmem:[%s4252_s5] ss:$0 sm:$0xff] }
 0xe6a   : > { %v3518_v53 = vld [vmem:[%s3795_s1] ss:$8 sps:$4 sm:$0xff]  }
 0xe6e   : > { %v3438_v28 = vpop.f32.mrf.mxu0 }
 0xe6f   : > { %v2285_v29 = vadd.f32 %v3438_v28, %v3939_v25  ;;  %v3522_v28 = vld [vmem:[%s3806_s2 + $0x38] sm:$0xff]  }
 0xe70   : > { %v2279_v15 = vpop.f32.mrf.mxu0 }
 0xe71   : > { %v2280_v30 = vadd.f32 %v2279_v15, %v3933_v22  ;;  %v2291_v10 = vsel %vm933_vm2, %v2285_v29, -inf  ;;  %v3524_v15 = vld [vmem:[%s3806_s2 + $0x30] sm:$0xff]  }
 0xe72   : > { %2292 = vmax.xlane.f32.xlu0 %v2291_v10  ;;  %v3526_v10 = vld [vmem:[%s3806_s2 + $0x28] sm:$0xff]  }
 0xe73   : > { %v2288_v20 = vsel %vm933_vm2, %v2280_v30, -inf }
 0xe74   : > { %2289 = vmax.xlane.f32.xlu1 %v2288_v20  ;;  %v3527_v20 = vld [vmem:[%s3806_s2 + $0x60] sm:$0xff]  }
 0xefb   : > { %v2293_v17 = vpop.xlane.xlu0 %2292 }
 0xefc   : > { %v2295_v31 = vsub.f32 %v2285_v29, %v2293_v17  ;;  %v3523_v29 = vld [vmem:[%s3806_s2 + $0x70] sm:$0xff]   ;;  %v3528_v17 = vld [vmem:[%s3806_s2 + $0x20] sm:$0xff]  }
 0xefd   : > { %v2290_v13 = vpop.xlane.xlu1 %2289 }
 0xefe   : > { %v2298_v62 = vmul.f32 1.442695, %v2295_v31  ;;  %v2294_v7 = vsub.f32 %v2280_v30, %v2290_v13  ;;  %v3525_v30 = vld [vmem:[%s3806_s2 + $0x68] sm:$0xff]   ;;  %v3529_v31 = vld [vmem:[%s3806_s2 + $0x58] sm:$0xff]  }
 0xeff   : > { %v3530_v13 = vld [vmem:[%s3806_s2 + $0x18] sm:$0xff]  }
 0xf00   : > { %3593 = vpow2.f32 %v2298_v62  ;;  %v2296_v55 = vmul.f32 1.442695, %v2294_v7 }
 0xf02   : > { %3595 = vpow2.f32 %v2296_v55 }
 0xf0d   : > { %v3594_v25 = vpop.eup %3593 }
 0xf0e   : > { %v2303_v32 = vsel %vm933_vm2, %v3594_v25, 0.0 }
 0xf0f   : > { %v3596_v22 = vpop.eup %3595  ;;  %2304 = vadd.xlane.f32.xlu0 %v2303_v32 }
 0xf10   : > { %v2300_v33 = vsel %vm933_vm2, %v3596_v22, 0.0 }
 0xf11   : > { %2301 = vadd.xlane.f32.xlu1 %v2300_v33 }
 0xf98   : > { %v2305_v37 = vpop.xlane.xlu0 %2304 }
 0xf99   : > { %3597 = vrcp.f32 %v2305_v37 }
 0xf9a   : > { %v2302_v38 = vpop.xlane.xlu1 %2301 }
 0xf9b   : > { %3599 = vrcp.f32 %v2302_v38 }
 0xfa6   : > { %v3598_v39 = vpop.eup %3597 }
 0xfa7   : > { %v2309_v44 = vmul.f32 %v3598_v39, %v3594_v25  ;;  %v3194_v39 = vld [vmem:[%s4254_s15] ss:$0 sm:$0xff]  ;;  %s4257_s15 = sld [smem:[#allocation15_spill]] (!%p3223_p5) }
 0xfa8   : > { %v3600_v40 = vpop.eup %3599 }
 0xfa9   : > { %v2308_v42 = vmul.f32 %v3600_v40, %v3596_v22 }
 0xfab   : > { %3443 = vmatprep.mubr.msk.f32.mxu1 %vm933_vm2, %v2308_v42 }
 0xfac   : > { %3444 = vmatmul.mubr.msk.f32.vlgmr.msra.gmra.mxu1 %vm933_vm2, %v2309_v44 }
0x106c   : > { %v3445_v50 = vpop.f32.mrf.mxu1 }
0x106d   : > { %v2394_v56 = vadd.f32 %v3445_v50, %v2200_v45  ;;  %v3520_v45 = vld [vmem:[%s3795_s1 + $0x4] ss:$8 sps:$4 sm:$0xff]   ;;  %v3532_v50 = vld [vmem:[%s3806_s2 + $0x10] sm:$0xff]  }
0x106e   : > { %v2384_v51 = vpop.f32.mrf.mxu1 }
0x106f   : > { %v2393_v57 = vadd.f32 %v2384_v51, %v2199_v27  ;;  %v3521_v27 = vld [vmem:[%s3806_s2 + $0x78] sm:$0xff]   ;;  %v3533_v51 = vld [vmem:[%s3806_s2 + $0x48] sm:$0xff]  }
0x1070   : > { %3307 = vmatprep.subr.bf16.mxu1 %v3521_v27 }
0x1071   : > { %v2395_v46 = vpack.c.bf16 %v2394_v56, %v2393_v57  ;;  %3308 = vmatpush3.bf16.msra.mxu1 %v3522_v28  ;;  %v3534_v56 = vld [vmem:[%s3806_s2 + $0x8] sm:$0xff]   ;;  %v3535_v57 = vld [vmem:[%s3806_s2 + $0x40] sm:$0xff]  }
0x1072   : > { %3309 = vmatprep.subr.bf16.mxu1 %v3523_v29 }
0x1073   : > { %3455 = vmatmul.mubr.msk.bf16.vlgmr.msra.gmra.mxu0 %vm786_vm1, %v2395_v46  ;;  %v3536_v46 = vld [vmem:[%s3806_s2] sm:$0xff]  }
0x1074   : > { %2622 = vmatprep.mubr.bf16.mxu0 %v3649_v4  ;;  %2599 = vmatpush1.bf16.msra.mxu0 %v3509_v24 }
0x1075   : > { %2600 = vmatprep.subr.bf16.mxu0 %v3514_v49  ;;  %3310 = vmatpush3.bf16.msra.mxu1 %v3524_v15 }
0x1076   : > { %3311 = vmatprep.subr.bf16.mxu1 %v3525_v30 }
0x1078   : > { %2601 = vmatpush1.bf16.msra.mxu0 %v3512_v60 }
0x1079   : > { %2602 = vmatprep.subr.bf16.mxu0 %v3517_v26  ;;  %3312 = vmatpush3.bf16.msra.mxu1 %v3526_v10 }
0x107a   : > { %3313 = vmatprep.subr.bf16.mxu1 %v3527_v20 }
0x107c   : > { %2603 = vmatpush1.bf16.msra.mxu0 %v3515_v5 }
0x107d   : > { %2604 = vmatprep.subr.bf16.mxu0 %v3520_v45  ;;  %3314 = vmatpush3.bf16.msra.mxu1 %v3528_v17 }
0x107e   : > { %3315 = vmatprep.subr.bf16.mxu1 %v3529_v31 }
0x1080   : > { %2605 = vmatpush1.bf16.msra.mxu0 %v3518_v53 }
0x1081   : > { %3316 = vmatpush3.bf16.msra.mxu1 %v3530_v13 }
0x1082   : > { %3317 = vmatprep.subr.bf16.mxu1 %v3531_v48 }
0x1085   : > { %3318 = vmatpush3.bf16.msra.mxu1 %v3532_v50 }
0x1086   : > { %3319 = vmatprep.subr.bf16.mxu1 %v3533_v51 }
0x1089   : > { %3320 = vmatpush3.bf16.msra.mxu1 %v3534_v56 }
0x108a   : > { %3321 = vmatprep.subr.bf16.mxu1 %v3535_v57 }
0x108d   : > { %3322 = vmatpush3.bf16.msra.mxu1 %v3536_v46 }
0x1133   : > { %v2472_v61 = vpop.f32.mrf.mxu0 }
0x1134   : > { %v2473_v6 = vadd.f32 %v3187_v58, %v2472_v61 }
0x1135   : > { %v3456_v41 = vpop.f32.mrf.mxu0 }
0x1136   : > { %v2479_v54 = vadd.f32 %v2473_v6, %v3836_v11 }
0x1137   : > { %v2475_v0 = vpop.f32.mrf.mxu0 }
0x1138   : > { %v2476_v63 = vadd.f32 %v3187_v58, %v2475_v0  ;;  %v2483_v8 = vsel %vm786_vm1, %v2479_v54, 0.0  ;;  %v2535_v58 = vld [vmem:[%s3800_s23] sm:$0x3] }
0x1139   : > { %2484 = vadd.xlane.f32.xlu1 %v2483_v8  ;;  %v3457_v1 = vpop.f32.mrf.mxu0  ;;  %v2544_v6 = vrot.slane %v2535_v58, %v3846_v18  ;;  %v2540_v41 = vrot.slane %v2535_v58, %v3843_v16  ;;  %v3204_v16 = vld [vmem:[%s706_s3] ss:$0 sm:$0xff] }
0x113a   : > { %v2480_v23 = vadd.f32 %v2476_v63, %v3838_v12 }
0x113c   : > { %v2486_v4 = vsel %vm786_vm1, %v2480_v23, 0.0 }
0x113d   : > { %2487 = vadd.xlane.f32.xlu0 %v2486_v4 }
0x11c2   : > { %v2485_v9 = vpop.xlane.xlu1 %2484 }
0x11c3   : > { %v2490_v2 = vmul.f32 0.015625, %v2485_v9 }
0x11c5   : > { %v2492_v19 = vsub.f32 %v2479_v54, %v2490_v2 }
0x11c6   : > { %v2488_v43 = vpop.xlane.xlu0 %2487 }
0x11c7   : > { %v2491_v11 = vmul.f32 0.015625, %v2488_v43  ;;  %v2494_v52 = vmul.f32 %v2492_v19, %v2492_v19 }
0x11c9   : > { %v2493_v14 = vsub.f32 %v2480_v23, %v2491_v11  ;;  %v2496_v21 = vsel %vm786_vm1, %v2494_v52, 0.0 }
0x11ca   : > { %2497 = vadd.xlane.f32.xlu1 %v2496_v21 }
0x11cb   : > { %v2495_v12 = vmul.f32 %v2493_v14, %v2493_v14 }
0x11cd   : > { %v2499_v59 = vsel %vm786_vm1, %v2495_v12, 0.0 }
0x11ce   : > { %2500 = vadd.xlane.f32.xlu0 %v2499_v59 }
0x1253   : > { %v2498_v62 = vpop.xlane.xlu1 %2497 }
0x1254   : > { %v2502_v7 = vmul.f32 0.015625, %v2498_v62 }
0x1256   : > { %v2504_v55 = vadd.f32 1e-05, %v2502_v7 }
0x1257   : > { %v2501_v25 = vpop.xlane.xlu0 %2500 }
0x1258   : > { %3601 = vrsqrt.f32 %v2504_v55  ;;  %v2503_v32 = vmul.f32 0.015625, %v2501_v25 }
0x125a   : > { %v2505_v22 = vadd.f32 1e-05, %v2503_v32 }
0x125c   : > { %3603 = vrsqrt.f32 %v2505_v22 }
0x1265   : > { %v3602_v33 = vpop.eup %3601 }
0x1266   : > { %v2508_v34 = vmul.f32 %v3602_v33, %v2492_v19  ;;  %v3221_v33 = vld [vmem:[%s709_s4] ss:$0 sm:$0xff] }
0x1268   : > { %v2516_v38 = vmul.f32 %v3193_v35, %v2508_v34 }
0x1269   : > { %v3604_v36 = vpop.eup %3603 }
0x126a   : > { %v2509_v37 = vmul.f32 %v3604_v36, %v2493_v14  ;;  %v2524_v42 = vadd.f32 %v3194_v39, %v2516_v38 }
0x126c   : > { %v2517_v40 = vmul.f32 %v3193_v35, %v2509_v37  ;;  %v3222_v35 = vld [vmem:[%s712_s21] ss:$0 sm:$0xff] }
0x126e   : > { %v2525_v44 = vadd.f32 %v3194_v39, %v2517_v40 }
0x1270   : > { %v2526_v47 = vpack.c.bf16 %v2525_v44, %v2524_v42 }
0x1272   : > { %3203 = vmatmul.mubr.msk.bf16.vlgmr.msra.gmra.mxu0 %vm786_vm1, %v2526_v47 }
0x1332   : > { %v2624_v61 = vpop.f32.mrf.mxu0 }
0x1333   : > { %v2625_v1 = vadd.f32 %v2624_v61, %v2540_v41 }
0x1334   : > { %v2626_v54 = vpop.f32.mrf.mxu0 }
0x1335   : > { %v2627_v63 = vadd.f32 %v2626_v54, %v2544_v6  ;;  %v2633_v43 = vmax.f32 %v2625_v1, 0.0 }
0x1336   : > { %v2628_v0 = vpop.f32.mrf.mxu0 }
0x1337   : > { %v2629_v8 = vadd.f32 %v2628_v0, %v2540_v41  ;;  %v2634_v2 = vmax.f32 %v2627_v63, 0.0 }
0x1338   : > { %v2630_v23 = vpop.f32.mrf.mxu0 }
0x1339   : > { %v2631_v4 = vadd.f32 %v2630_v23, %v2544_v6  ;;  %v2635_v9 = vmax.f32 %v2629_v8, 0.0 }
0x133b   : > { %v2636_v19 = vmax.f32 %v2631_v4, 0.0  ;;  %v2637_v52 = vpack.c.bf16 %v2635_v9, %v2633_v43 }
0x133d   : > { %v2638_v11 = vpack.c.bf16 %v2636_v19, %v2634_v2 }
0x133f   : > { %2806 = vmatprep.mubr.bf16.mxu1 %v2638_v11 }
0x1340   : > { %2807 = vmatmul.mubr.bf16.vlgmr.msra.gmra.mxu1 %v2637_v52 }
0x1400   : > { %v3323_v14 = vpop.f32.mrf.mxu1 }
0x1402   : > { %v3324_v18 = vpop.f32.mrf.mxu1 }
0x1403   : > { %v3325_v21 = vadd.f32 %v3324_v18, %v3323_v14 }
0x1404   : > { %v3326_v12 = vpop.f32.mrf.mxu1 }
0x1405   : > { %v2809_v59 = vadd.f32 %v3325_v21, %v3204_v16 }
0x1406   : > { %v3327_v3 = vpop.f32.mrf.mxu1 }
0x1407   : > { %v3328_v24 = vadd.f32 %v3327_v3, %v3326_v12  ;;  %v2815_v49 = vadd.f32 %v2809_v59, %v2809_v59 }
0x1409   : > { %v2812_v60 = vadd.f32 %v3328_v24, %v3204_v16  ;;  %v2819_v5 = vsel %vm786_vm1, %v2815_v49, 0.0 }
0x140a   : > { %2820 = vadd.xlane.f32.xlu1 %v2819_v5 }
0x140b   : > { %v2816_v26 = vadd.f32 %v2812_v60, %v2812_v60 }
0x140d   : > { %v2822_v45 = vsel %vm786_vm1, %v2816_v26, 0.0 }
0x140e   : > { %2823 = vadd.xlane.f32.xlu0 %v2822_v45 }
0x1493   : > { %v2821_v53 = vpop.xlane.xlu1 %2820 }
0x1494   : > { %v2825_v27 = vmul.f32 0.015625, %v2821_v53 }
0x1496   : > { %v2827_v28 = vsub.f32 %v2815_v49, %v2825_v27 }
0x1497   : > { %v2824_v29 = vpop.xlane.xlu0 %2823 }
0x1498   : > { %v2826_v15 = vmul.f32 0.015625, %v2824_v29  ;;  %v2829_v30 = vmul.f32 %v2827_v28, %v2827_v28 }
0x149a   : > { %v2828_v10 = vsub.f32 %v2816_v26, %v2826_v15  ;;  %v2831_v20 = vsel %vm786_vm1, %v2829_v30, 0.0 }
0x149b   : > { %2832 = vadd.xlane.f32.xlu1 %v2831_v20 }
0x149c   : > { %v2830_v17 = vmul.f32 %v2828_v10, %v2828_v10 }
0x149e   : > { %v2834_v31 = vsel %vm786_vm1, %v2830_v17, 0.0 }
0x149f   : > { %2835 = vadd.xlane.f32.xlu0 %v2834_v31 }
0x1524   : > { %v2833_v13 = vpop.xlane.xlu1 %2832 }
0x1525   : > { %v2837_v62 = vmul.f32 0.015625, %v2833_v13 }
0x1527   : > { %v2839_v7 = vadd.f32 1e-05, %v2837_v62 }
0x1528   : > { %v2836_v55 = vpop.xlane.xlu0 %2835 }
0x1529   : > { %3605 = vrsqrt.f32 %v2839_v7  ;;  %v2838_v25 = vmul.f32 0.015625, %v2836_v55 }
0x152b   : > { %v2840_v32 = vadd.f32 1e-05, %v2838_v25 }
0x152d   : > { %3607 = vrsqrt.f32 %v2840_v32 }
0x1536   : > { %v3606_v22 = vpop.eup %3605 }
0x1537   : > { %v2843_v34 = vmul.f32 %v3606_v22, %v2827_v28 }
0x1539   : > { %v2851_v36 = vmul.f32 %v3221_v33, %v2843_v34 }
0x153a   : > { %v3608_v37 = vpop.eup %3607 }
0x153b   : > { %v2859_v38 = vadd.f32 %v3222_v35, %v2851_v36  ;;  %v2844_v39 = vmul.f32 %v3608_v37, %v2828_v10 }
0x153d   : > { %2861 = vst.msk [vmem:[#allocation2] sm:$0xff] %vm786_vm1, %v2859_v38  ;;  %v2852_v40 = vmul.f32 %v3221_v33, %v2844_v39  ;;  %2866 = sbr.rel (%p3223_p5) target bundleno = 5659 (0x161b), region = 96 }
0x153f   : > { %v2860_v42 = vadd.f32 %v3222_v35, %v2852_v40 }
0x1541   : > { %2862 = vst.msk [vmem:[#allocation2 + $0x8] sm:$0xff] %vm786_vm1, %v2860_v42 }
0x1542   : > { %v3609_v44 = vld [vmem:[%s4255_s24 + $0x18] sm:$0xff]   ;;  %v3653_v47 = vmov 0.0   ;;  %v3610_v48 = vld [vmem:[%s4256_s17 + $0x10] sm:$0xff]   ;;  %vm3654_vm4 = vmmov 0   ;;  %v3611_v50 = vld [vmem:[%s4256_s17 + $0x8] sm:$0xff]   ;;  %v2867_v56 = vpack.c.bf16 %v2860_v42, %v2859_v38 }
0x1543   : > { %3458 = vmatprep.subr.bf16.mxu0 %v3653_v47  ;;  %3466 = vmatprep.mubr.msk.bf16.mxu0 %vm3654_vm4, %v3653_v47  ;;  %v3612_v51 = vld [vmem:[%s4256_s17] sm:$0xff]  }
0x1544   : > { %3459 = vmatpush3.bf16.msra.mxu0 %v3609_v44  ;;  %v3224_v57 = vld [vmem:[%s4257_s15] ss:$0 sm:$0xff] }
0x1545   : > { %3460 = vmatprep.subr.bf16.mxu0 %v3653_v47 }
0x1548   : > { %3461 = vmatpush3.bf16.msra.mxu0 %v3610_v48 }
0x1549   : > { %3462 = vmatprep.subr.bf16.mxu0 %v3653_v47 }
0x154c   : > { %3463 = vmatpush3.bf16.msra.mxu0 %v3611_v50 }
0x154d   : > { %3464 = vmatprep.subr.bf16.mxu0 %v3653_v47 }
0x1550   : > { %3465 = vmatpush3.bf16.msra.mxu0 %v3612_v51 }
0x1553   : > { %3467 = vmatmul.mubr.msk.bf16.vlgmr.msra.gmra.mxu0 %vm786_vm1, %v2867_v56 }
0x1613   : > { %v2944_v46 = vpop.f32.mrf.mxu0 }
0x1614   : > { %v2945_v58 = vadd.f32 %v3224_v57, %v2944_v46 }
0x1615   : > { %v3468_v61 = vpop.f32.mrf.mxu0 }
0x1616   : > { %2951 = vst [vmem:[#allocation3] sm:$0xff] %v2945_v58 }
0x1617   : > { %v2947_v6 = vpop.f32.mrf.mxu0 }
0x1618   : > { %v2948_v41 = vadd.f32 %v3224_v57, %v2947_v6 }
0x1619   : > { %v3469_v54 = vpop.f32.mrf.mxu0 }
0x161a   : > { %2952 = vst [vmem:[#allocation3 + $0x8] sm:$0xff] %v2948_v41 }
0x161b PF: > { %p3474_p6 = scmp.eq.s32.totalorder %s3754_s25, 5  ;;  %s3655_s23 = smov [#allocation3]  }
0x161c   : > { %s2959_s2 = sshll.u32 %s3655_s23, 4  ;;  %s2960_s2 = int_to_ptr.vmem [resolvable:$true] %s2959_s2 }
0x161d   : > { %s3613_s3 = scalar_lea.vmem %s2960_s2, 256  ;;  %p3620_p10 = scmp.lt.s32.totalorder %s2960_s2, %s2960_s2 }
0x161e   : > { %p3614_p7 = scmp.ne.s32.totalorder %s2960_s2, %s3613_s3  ;;  %p3621_p11 = scmp.lt.s32.totalorder %s3613_s3, %s3613_s3 }
0x1620   : > { %p3615_p8 = pnand %p3614_p7, %p3474_p6  ;;  %p3622_p12 = por %p3621_p11, %p3620_p10 }
0x1622   : > { %p3616_p9 = pneg %p3615_p8 }
0x1624   : > { %p3623_p13 = pnand %p3622_p12, %p3616_p9 }
0x1626   : > { %3626 = shalt.err (!%p3623_p13)
}
0x1627   : > { %s3656_s0 = smov 128   ;;  %s3657_s27 = smov 8  }
0x1628   : > { %s4258_s22 = sld [smem:[#allocation16_spill]] }
0x162e   : > { %3471 = dma.vmem_to_hbm [thread:$0]  (%p3474_p6), %s2960_s2, 256, %s4258_s22, [#allocation4], %s3656_s0, %s3656_s0, %s3657_s27  }
0x162f   : > { %3642 = dma.done.wait (%p3474_p6), [#allocation4], 256  }
0x1630   : > { %3644 = vsyncadd (%p3474_p6), [#allocation4], 4294967040 }
0x1631 PF: > { %s4259_s24 = sld [smem:[#allocation6_spill]] }
0x1637   : > { %s28_s24 = sadd.s32 1, %s4259_s24  }
0x1638   : > { %p25_p0 = scmp.ge.s32.totalorder %s28_s24, 8  }
0x163a   :  { %27 = sbr.rel (!%p25_p0) target bundleno = 11 (0xb), region = 156 }
0x163f   :  { %2975 = vsyncpa [#allocation4], 1 }
0x1640   :  { %2977 = vsyncpa [#allocation4 + $0x1], 1 }

</bundles_post_ra>
